<compile_context>
chip_gen: v6e
topology: v6e:2x2x1
jax: 0.10.0
libtpu: 0.0.40
codegen_flags: <defaults>
</compile_context>

<pallas_src>
import math

import jax
import jax.numpy as jnp
from jax import lax
from jax.experimental import pallas as pl
from jax.experimental.pallas import tpu as pltpu

# ----------------------------- hyperparameters -----------------------------
BATCH = 2
MAX_DRUG_LEN = 16        # hp.MAX_DRUG_LEN
MAX_PROTEIN_LEN = 24     # hp.MAX_PROTEIN_LEN
TOK_PER_EX = MAX_DRUG_LEN + MAX_PROTEIN_LEN      # 40
SMI_VOCAB = 64           # hp.smi_emb
PRO_VOCAB = 26           # hp.pro_emb
PRO_VOCAB_PAD = 32       # pro table rows padded to a sublane multiple
COMB_VOCAB = SMI_VOCAB + PRO_VOCAB_PAD           # 96 (combined smi|pro table)
HID = 32                 # embedding / transformer hidden dim
FF_HID = 128             # transformer feed-forward hidden dim
OUT_HID = 512            # nn.Linear(64, 512)
N_CLASSES = 2
OUT_PAD = 8              # padded logits lane width (sliced to 2 outside)
LN_EPS = 1e-5
W_ROWS = 3 * HID + FF_HID                        # 224 rows per transformer block
WBIG_ROWS = 2 * W_ROWS + COMB_VOCAB              # 544 (both blocks + emb table)
HEAD_ROWS = 80           # w1 (64) + w2^T pad (8) + b1 + b2 + pad -> 80


# ------------------------------ kernel helpers ------------------------------
def _layer_norm(x, gamma, beta):
    mean = jnp.mean(x, axis=-1, keepdims=True)
    var = jnp.mean(jnp.square(x - mean), axis=-1, keepdims=True)
    inv = lax.rsqrt(var + LN_EPS)
    return (x - mean) * inv * gamma + beta


def _transformer_block(x, batch, seq, wbig_ref, vecs_ref, blk):
    """x: [batch*seq, HID] -> [batch*seq, HID].  Weights come from packed refs."""
    row = blk * W_ROWS
    # static slices of the packed bf16 weight buffer (no per-tensor DMAs)
    wqkv = wbig_ref[row:row + HID, 0:3 * HID].astype(jnp.float32)            # [32, 96]
    wo = wbig_ref[row + HID:row + 2 * HID, 0:HID].astype(jnp.float32)        # [32, 32]
    wf1 = wbig_ref[row + 2 * HID:row + 3 * HID, 0:FF_HID].astype(jnp.float32)  # [32,128]
    wf2 = wbig_ref[row + 3 * HID:row + 3 * HID + FF_HID, 0:HID].astype(jnp.float32)  # [128,32]

    vec = vecs_ref[blk * 8:(blk + 1) * 8, :]      # [8, 128] f32 (biases + LN params)
    bqkv = vec[0:1, 0:3 * HID]
    bo = vec[1:2, 0:HID]
    g1 = vec[2:3, 0:HID]
    be1 = vec[3:4, 0:HID]
    bf1 = vec[4:5, 0:FF_HID]
    bf2 = vec[5:6, 0:HID]
    g2 = vec[6:7, 0:HID]
    be2 = vec[7:8, 0:HID]

    # fused QKV projection (1/sqrt(HID) already folded into wq/bq at pack time)
    qkv = jnp.dot(x, wqkv, preferred_element_type=jnp.float32) + bqkv        # [N, 96]
    q = qkv[:, 0:HID].reshape(batch, seq, HID)
    k = qkv[:, HID:2 * HID].reshape(batch, seq, HID)
    v = qkv[:, 2 * HID:3 * HID].reshape(batch, seq, HID)

    # attention scores via batched dot_general (no explicit k transpose)
    s = jnp.einsum("bqd,bkd->bqk", q, k, preferred_element_type=jnp.float32)
    m = jnp.max(s, axis=-1, keepdims=True)
    p = jnp.exp(s - m)
    attn = p * pl.reciprocal(jnp.sum(p, axis=-1, keepdims=True), approx=True)
    ctx = jnp.einsum("bqk,bkd->bqd", attn, v,
                     preferred_element_type=jnp.float32).reshape(batch * seq, HID)

    attn_out = jnp.dot(ctx, wo, preferred_element_type=jnp.float32) + bo
    h = _layer_norm(x + attn_out, g1, be1)

    f = jnp.dot(h, wf1, preferred_element_type=jnp.float32) + bf1
    f = jnp.maximum(f, 0.0)                                   # ReLU
    f = jnp.dot(f, wf2, preferred_element_type=jnp.float32) + bf2
    return _layer_norm(h + f, g2, be2)


# -------------------------------- fused kernel -------------------------------
def _make_kernel(batch):
    """Kernel body parameterized by per-invocation batch (2 gridless, 1 gridded)."""
    n_smi = batch * MAX_DRUG_LEN
    n_pro = batch * MAX_PROTEIN_LEN
    n_tok = n_smi + n_pro

    def kernel(ids_ref, wbig_ref, vecs_ref, head_ref, o_ref):
        # --- embeddings: one one-hot matmul against the combined smi|pro table ---
        ids = ids_ref[...]                                            # [n_tok, 1] int32
        iota = lax.broadcasted_iota(jnp.int32, (n_tok, COMB_VOCAB), 1)
        onehot = (ids == iota).astype(jnp.bfloat16)                   # [n_tok, 96]
        tab = wbig_ref[2 * W_ROWS:2 * W_ROWS + COMB_VOCAB, 0:HID]     # [96, 32] bf16
        emb = jnp.dot(onehot, tab, preferred_element_type=jnp.float32)  # [n_tok, 32]
        smi_x = emb[0:n_smi, :]
        pro_x = emb[n_smi:n_tok, :]

        # --- transformer encoder blocks ---
        smi_y = _transformer_block(smi_x, batch, MAX_DRUG_LEN, wbig_ref, vecs_ref, 0)
        pro_y = _transformer_block(pro_x, batch, MAX_PROTEIN_LEN, wbig_ref, vecs_ref, 1)

        # max over sequence dim
        smi_max = jnp.max(smi_y.reshape(batch, MAX_DRUG_LEN, HID), axis=1)     # [b, 32]
        pro_max = jnp.max(pro_y.reshape(batch, MAX_PROTEIN_LEN, HID), axis=1)  # [b, 32]

        # --- output MLP: concat avoided by splitting w1 into the smi / pro halves ---
        w1a = head_ref[0:HID, :].astype(jnp.float32)                  # [32, 512]
        w1b = head_ref[HID:2 * HID, :].astype(jnp.float32)            # [32, 512]
        tail = head_ref[2 * HID:2 * HID + 16, :].astype(jnp.float32)  # [16, 512]
        w2t = tail[0:OUT_PAD, :]                                      # [8, 512] (rows>=2 zero)
        b1 = tail[OUT_PAD:OUT_PAD + 1, :]                             # [1, 512]
        b2 = tail[OUT_PAD + 1:OUT_PAD + 2, 0:OUT_PAD]                 # [1, 8] (lanes>=2 zero)

        h = (jnp.dot(smi_max, w1a, preferred_element_type=jnp.float32)
             + jnp.dot(pro_max, w1b, preferred_element_type=jnp.float32) + b1)
        h = jnp.maximum(h, 0.0)                 # Dropout (inference) is identity
        # contract the 512 dim against w2^T (no 512x128 mostly-zero matmul)
        logits = lax.dot_general(h, w2t, (((1,), (1,)), ((), ())),
                                 preferred_element_type=jnp.float32) + b2     # [b, 8]
        o_ref[...] = logits.reshape(batch, 1, OUT_PAD)

    return kernel


# --------------------------- parameter creation -----------------------------
def _normal(key, shape, scale=0.02):
    return scale * jax.random.normal(key, shape, dtype=jnp.float32)


def make_transformer_params(key):
    ks = jax.random.split(key, 6)
    return {
        "wq": _normal(ks[0], (HID, HID)), "bq": jnp.zeros((HID,), jnp.float32),
        "wk": _normal(ks[1], (HID, HID)), "bk": jnp.zeros((HID,), jnp.float32),
        "wv": _normal(ks[2], (HID, HID)), "bv": jnp.zeros((HID,), jnp.float32),
        "wo": _normal(ks[3], (HID, HID)), "bo": jnp.zeros((HID,), jnp.float32),
        "ln1_g": jnp.ones((HID,), jnp.float32), "ln1_b": jnp.zeros((HID,), jnp.float32),
        "wf1": _normal(ks[4], (HID, FF_HID)), "bf1": jnp.zeros((FF_HID,), jnp.float32),
        "wf2": _normal(ks[5], (FF_HID, HID)), "bf2": jnp.zeros((HID,), jnp.float32),
        "ln2_g": jnp.ones((HID,), jnp.float32), "ln2_b": jnp.zeros((HID,), jnp.float32),
    }


def pack_transformer(p):
    """Pack one block into a [224,128] weight slab + [8,128] bias/LN slab.

    The 1/sqrt(HID) attention scale is folded into wq / bq here (review item #5).
    """
    scale = 1.0 / math.sqrt(HID)
    wmat = jnp.zeros((W_ROWS, 128), jnp.float32)
    wqkv = jnp.concatenate([p["wq"] * scale, p["wk"], p["wv"]], axis=1)     # [32, 96]
    wmat = wmat.at[0:HID, 0:3 * HID].set(wqkv)
    wmat = wmat.at[HID:2 * HID, 0:HID].set(p["wo"])
    wmat = wmat.at[2 * HID:3 * HID, 0:FF_HID].set(p["wf1"])
    wmat = wmat.at[3 * HID:3 * HID + FF_HID, 0:HID].set(p["wf2"])

    vec = jnp.zeros((8, 128), jnp.float32)
    vec = vec.at[0, 0:3 * HID].set(
        jnp.concatenate([p["bq"] * scale, p["bk"], p["bv"]]))
    vec = vec.at[1, 0:HID].set(p["bo"])
    vec = vec.at[2, 0:HID].set(p["ln1_g"])
    vec = vec.at[3, 0:HID].set(p["ln1_b"])
    vec = vec.at[4, 0:FF_HID].set(p["bf1"])
    vec = vec.at[5, 0:HID].set(p["bf2"])
    vec = vec.at[6, 0:HID].set(p["ln2_g"])
    vec = vec.at[7, 0:HID].set(p["ln2_b"])
    return wmat, vec


def make_params(key):
    k_es, k_ep, k_ts, k_tp, k_o1, k_o2 = jax.random.split(key, 6)

    # combined embedding table: smi rows 0..63, pro rows 64..95 (padding rows zeroed)
    smi_tab = _normal(k_es, (SMI_VOCAB, HID), scale=1.0).at[0].set(0.0)     # padding_idx=0
    pro_tab = jnp.zeros((PRO_VOCAB_PAD, HID), jnp.float32)
    pro_tab = pro_tab.at[0:PRO_VOCAB].set(_normal(k_ep, (PRO_VOCAB, HID), scale=1.0))
    pro_tab = pro_tab.at[0].set(0.0)                                        # padding_idx=0
    comb_tab = jnp.concatenate([smi_tab, pro_tab], axis=0)                  # [96, 32]

    smi_w, smi_v = pack_transformer(make_transformer_params(k_ts))
    pro_w, pro_v = pack_transformer(make_transformer_params(k_tp))

    # one big weight slab: smi block | pro block | embedding table
    wbig = jnp.zeros((WBIG_ROWS, 128), jnp.float32)
    wbig = wbig.at[0:W_ROWS].set(smi_w)
    wbig = wbig.at[W_ROWS:2 * W_ROWS].set(pro_w)
    wbig = wbig.at[2 * W_ROWS:2 * W_ROWS + COMB_VOCAB, 0:HID].set(comb_tab)
    vecs = jnp.concatenate([smi_v, pro_v], axis=0)                          # [16, 128]

    # output MLP: Linear(64, 512) -> ReLU -> Linear(512, 2), w2 stored transposed
    w1 = _normal(k_o1, (2 * HID, OUT_HID))
    b1 = jnp.zeros((OUT_HID,), jnp.float32)
    w2 = _normal(k_o2, (OUT_HID, N_CLASSES))
    b2 = jnp.zeros((N_CLASSES,), jnp.float32)

    head = jnp.zeros((HEAD_ROWS, OUT_HID), jnp.float32)
    head = head.at[0:2 * HID, :].set(w1)                                    # rows 0..63
    head = head.at[2 * HID:2 * HID + N_CLASSES, :].set(w2.T)                # rows 64..65
    head = head.at[2 * HID + OUT_PAD, :].set(b1)                            # row 72
    head = head.at[2 * HID + OUT_PAD + 1, 0:N_CLASSES].set(b2)              # row 73

    return {"wbig": wbig.astype(jnp.bfloat16),       # bf16 weights: half the DMA bytes
            "vecs": vecs,                            # f32 biases / LN params (tiny)
            "head": head.astype(jnp.bfloat16)}


# ------------------------------ full forward ---------------------------------
def _use_batch_grid():
    """Use a 2-wide parallel batch grid only on 2-TensorCore chips (v7x)."""
    try:
        kind = jax.devices()[0].device_kind.lower()
    except Exception:
        return False
    return ("v7" in kind) and (BATCH >= 2)


_USE_BATCH_GRID = _use_batch_grid()

_COST = pl.CostEstimate(flops=4_000_000, transcendentals=2_000, bytes_accessed=250_000)


@jax.jit
def trans_forward(params, smi_ids, prot_ids):
    smi = smi_ids.astype(jnp.int32)
    pro = prot_ids.astype(jnp.int32) + SMI_VOCAB      # offset into the combined table

    if _USE_BATCH_GRID:
        # per-example token layout: [b0 smi(16), b0 pro(24), b1 smi(16), b1 pro(24)]
        ids_all = jnp.concatenate([smi, pro], axis=1).reshape(BATCH * TOK_PER_EX, 1)
        padded = pl.pallas_call(
            _make_kernel(1),
            out_shape=jax.ShapeDtypeStruct((BATCH, 1, OUT_PAD), jnp.float32),
            grid=(BATCH,),
            in_specs=[
                pl.BlockSpec((TOK_PER_EX, 1), lambda b: (b, 0)),
                pl.BlockSpec((WBIG_ROWS, 128), lambda b: (0, 0)),
                pl.BlockSpec((16, 128), lambda b: (0, 0)),
                pl.BlockSpec((HEAD_ROWS, OUT_HID), lambda b: (0, 0)),
            ],
            out_specs=pl.BlockSpec((1, 1, OUT_PAD), lambda b: (b, 0, 0)),
            compiler_params=pltpu.CompilerParams(
                dimension_semantics=("parallel",)),
            cost_estimate=_COST,
        )(ids_all, params["wbig"], params["vecs"], params["head"])
    else:
        # gridless single invocation (v5e/v6e): all smi tokens, then all pro tokens
        ids_all = jnp.concatenate([smi.reshape(-1), pro.reshape(-1)]).reshape(-1, 1)
        vmem = pl.BlockSpec(memory_space=pltpu.MemorySpace.VMEM)
        padded = pl.pallas_call(
            _make_kernel(BATCH),
            out_shape=jax.ShapeDtypeStruct((BATCH, 1, OUT_PAD), jnp.float32),
            in_specs=[vmem] * 4,
            out_specs=vmem,
            cost_estimate=_COST,
        )(ids_all, params["wbig"], params["vecs"], params["head"])

    return padded.reshape(BATCH, OUT_PAD)[:, :N_CLASSES]                     # [B, 2]


if __name__ == "__main__":
    key = jax.random.PRNGKey(0)
    k_par, k_smi, k_pro = jax.random.split(key, 3)

    params = make_params(k_par)
    smi_ids = jax.random.randint(k_smi, (BATCH, MAX_DRUG_LEN), 0, SMI_VOCAB, dtype=jnp.int32)
    prot_ids = jax.random.randint(k_pro, (BATCH, MAX_PROTEIN_LEN), 0, PRO_VOCAB, dtype=jnp.int32)

    logits = trans_forward(params, smi_ids, prot_ids)
    jax.block_until_ready(logits)
    assert logits.shape == (BATCH, N_CLASSES), logits.shape
    assert bool(jnp.all(jnp.isfinite(logits)))
    print("KERNEL_OK")
</pallas_src>

<mosaic_0001>
module attributes {stable_mosaic.version = 11 : i64} {
  func.func @kernel(%arg0: memref<80x1xi32, #tpu.memory_space<vmem>>, %arg1: memref<544x128xbf16, #tpu.memory_space<vmem>>, %arg2: memref<16x128xf32, #tpu.memory_space<vmem>>, %arg3: memref<80x512xbf16, #tpu.memory_space<vmem>>, %arg4: memref<2x1x8xf32, #tpu.memory_space<vmem>>) attributes {dimension_semantics = [], scalar_prefetch = 0 : i64, scratch_operands = 0 : i64, tpu.core_type = #tpu.core_type<tc>} {
    %c0 = arith.constant 0 : index
    %c0_0 = arith.constant 0 : index
    %0 = vector.load %arg0[%c0, %c0_0] : memref<80x1xi32, #tpu.memory_space<vmem>>, vector<80x1xi32>
    %1 = tpu.iota {dimensions = array<i32: 1>} : vector<80x96xi32>
    %2 = vector.broadcast %0 : vector<80x1xi32> to vector<80x96xi32>
    %3 = arith.cmpi eq, %2, %1 : vector<80x96xi32>
    %4 = arith.extui %3 : vector<80x96xi1> to vector<80x96xi32>
    %5 = arith.sitofp %4 : vector<80x96xi32> to vector<80x96xf32>
    %6 = arith.truncf %5 : vector<80x96xf32> to vector<80x96xbf16>
    %c448 = arith.constant 448 : index
    %c0_1 = arith.constant 0 : index
    %7 = vector.load %arg1[%c448, %c0_1] : memref<544x128xbf16, #tpu.memory_space<vmem>>, vector<96x32xbf16>
    %cst = arith.constant dense<0.000000e+00> : vector<80x32xf32>
    %8 = tpu.matmul %6, %7, %cst {dimension_numbers = #tpu.dot_dimension_numbers<[1], [0], [0], [1], [0, 0, 1, 1], [], []>} : vector<80x96xbf16>, vector<96x32xbf16>, vector<80x32xf32> -> vector<80x32xf32>
    %9 = vector.extract_strided_slice %8 {offsets = [0, 0], sizes = [32, 32], strides = [1, 1]} : vector<80x32xf32> to vector<32x32xf32>
    %10 = vector.extract_strided_slice %8 {offsets = [32, 0], sizes = [48, 32], strides = [1, 1]} : vector<80x32xf32> to vector<48x32xf32>
    %c0_2 = arith.constant 0 : index
    %c0_3 = arith.constant 0 : index
    %11 = vector.load %arg1[%c0_2, %c0_3] : memref<544x128xbf16, #tpu.memory_space<vmem>>, vector<32x96xbf16>
    %12 = arith.extf %11 : vector<32x96xbf16> to vector<32x96xf32>
    %c32 = arith.constant 32 : index
    %c0_4 = arith.constant 0 : index
    %13 = vector.load %arg1[%c32, %c0_4] : memref<544x128xbf16, #tpu.memory_space<vmem>>, vector<32x32xbf16>
    %14 = arith.extf %13 : vector<32x32xbf16> to vector<32x32xf32>
    %c64 = arith.constant 64 : index
    %c0_5 = arith.constant 0 : index
    %15 = vector.load %arg1[%c64, %c0_5] : memref<544x128xbf16, #tpu.memory_space<vmem>>, vector<32x128xbf16>
    %16 = arith.extf %15 : vector<32x128xbf16> to vector<32x128xf32>
    %c96 = arith.constant 96 : index
    %c0_6 = arith.constant 0 : index
    %17 = vector.load %arg1[%c96, %c0_6] : memref<544x128xbf16, #tpu.memory_space<vmem>>, vector<128x32xbf16>
    %18 = arith.extf %17 : vector<128x32xbf16> to vector<128x32xf32>
    %c0_7 = arith.constant 0 : index
    %c0_8 = arith.constant 0 : index
    %19 = vector.load %arg2[%c0_7, %c0_8] : memref<16x128xf32, #tpu.memory_space<vmem>>, vector<8x128xf32>
    %20 = vector.extract_strided_slice %19 {offsets = [0, 0], sizes = [1, 96], strides = [1, 1]} : vector<8x128xf32> to vector<1x96xf32>
    %21 = vector.extract_strided_slice %19 {offsets = [1, 0], sizes = [1, 32], strides = [1, 1]} : vector<8x128xf32> to vector<1x32xf32>
    %22 = vector.extract_strided_slice %19 {offsets = [2, 0], sizes = [1, 32], strides = [1, 1]} : vector<8x128xf32> to vector<1x32xf32>
    %23 = vector.extract_strided_slice %19 {offsets = [3, 0], sizes = [1, 32], strides = [1, 1]} : vector<8x128xf32> to vector<1x32xf32>
    %24 = vector.extract_strided_slice %19 {offsets = [4, 0], sizes = [1, 128], strides = [1, 1]} : vector<8x128xf32> to vector<1x128xf32>
    %25 = vector.extract_strided_slice %19 {offsets = [5, 0], sizes = [1, 32], strides = [1, 1]} : vector<8x128xf32> to vector<1x32xf32>
    %26 = vector.extract_strided_slice %19 {offsets = [6, 0], sizes = [1, 32], strides = [1, 1]} : vector<8x128xf32> to vector<1x32xf32>
    %27 = vector.extract_strided_slice %19 {offsets = [7, 0], sizes = [1, 32], strides = [1, 1]} : vector<8x128xf32> to vector<1x32xf32>
    %cst_9 = arith.constant dense<0.000000e+00> : vector<32x96xf32>
    %28 = tpu.matmul %9, %12, %cst_9 {dimension_numbers = #tpu.dot_dimension_numbers<[1], [0], [0], [1], [0, 0, 1, 1], [], []>} : vector<32x32xf32>, vector<32x96xf32>, vector<32x96xf32> -> vector<32x96xf32>
    %29 = vector.broadcast %20 : vector<1x96xf32> to vector<32x96xf32>
    %30 = arith.addf %28, %29 : vector<32x96xf32>
    %31 = vector.extract_strided_slice %30 {offsets = [0, 0], sizes = [32, 32], strides = [1, 1]} : vector<32x96xf32> to vector<32x32xf32>
    %32 = vector.shape_cast %31 : vector<32x32xf32> to vector<2x16x32xf32>
    %33 = vector.extract_strided_slice %30 {offsets = [0, 32], sizes = [32, 32], strides = [1, 1]} : vector<32x96xf32> to vector<32x32xf32>
    %34 = vector.shape_cast %33 : vector<32x32xf32> to vector<2x16x32xf32>
    %35 = vector.extract_strided_slice %30 {offsets = [0, 64], sizes = [32, 32], strides = [1, 1]} : vector<32x96xf32> to vector<32x32xf32>
    %36 = vector.shape_cast %35 : vector<32x32xf32> to vector<2x16x32xf32>
    "tpu.trace_start"() <{level = 10 : i32, message = "bqd,bkd->bqk"}> : () -> ()
    %cst_10 = arith.constant dense<0.000000e+00> : vector<2x16x16xf32>
    %37 = tpu.matmul %32, %34, %cst_10 {dimension_numbers = #tpu.dot_dimension_numbers<[2], [2], [1], [1], [0, 0, 0, 1, 1, 1], [0], [0]>} : vector<2x16x32xf32>, vector<2x16x32xf32>, vector<2x16x16xf32> -> vector<2x16x16xf32>
    "tpu.trace_stop"() : () -> ()
    %cst_11 = arith.constant dense<0xFF800000> : vector<2x16xf32>
    %38 = vector.multi_reduction <maximumf>, %37, %cst_11 [2] : vector<2x16x16xf32> to vector<2x16xf32>
    %39 = vector.shape_cast %38 : vector<2x16xf32> to vector<2x16x1xf32>
    %40 = vector.broadcast %39 : vector<2x16x1xf32> to vector<2x16x16xf32>
    %41 = arith.subf %37, %40 : vector<2x16x16xf32>
    %42 = math.exp %41 : vector<2x16x16xf32>
    %cst_12 = arith.constant dense<0.000000e+00> : vector<2x16xf32>
    %43 = vector.multi_reduction <add>, %42, %cst_12 [2] : vector<2x16x16xf32> to vector<2x16xf32>
    %44 = vector.shape_cast %43 : vector<2x16xf32> to vector<2x16x1xf32>
    %45 = tpu.reciprocal %44 {approx = true} : vector<2x16x1xf32> -> vector<2x16x1xf32>
    %46 = vector.broadcast %45 : vector<2x16x1xf32> to vector<2x16x16xf32>
    %47 = arith.mulf %42, %46 : vector<2x16x16xf32>
    "tpu.trace_start"() <{level = 10 : i32, message = "bqk,bkd->bqd"}> : () -> ()
    %cst_13 = arith.constant dense<0.000000e+00> : vector<2x16x32xf32>
    %48 = tpu.matmul %47, %36, %cst_13 {dimension_numbers = #tpu.dot_dimension_numbers<[2], [1], [1], [2], [0, 0, 0, 1, 1, 2], [0], [0]>} : vector<2x16x16xf32>, vector<2x16x32xf32>, vector<2x16x32xf32> -> vector<2x16x32xf32>
    "tpu.trace_stop"() : () -> ()
    %49 = vector.shape_cast %48 : vector<2x16x32xf32> to vector<32x32xf32>
    %cst_14 = arith.constant dense<0.000000e+00> : vector<32x32xf32>
    %50 = tpu.matmul %49, %14, %cst_14 {dimension_numbers = #tpu.dot_dimension_numbers<[1], [0], [0], [1], [0, 0, 1, 1], [], []>} : vector<32x32xf32>, vector<32x32xf32>, vector<32x32xf32> -> vector<32x32xf32>
    %51 = vector.broadcast %21 : vector<1x32xf32> to vector<32x32xf32>
    %52 = arith.addf %50, %51 : vector<32x32xf32>
    %53 = arith.addf %9, %52 : vector<32x32xf32>
    %cst_15 = arith.constant dense<0.000000e+00> : vector<32xf32>
    %54 = vector.multi_reduction <add>, %53, %cst_15 [1] : vector<32x32xf32> to vector<32xf32>
    %55 = vector.shape_cast %54 : vector<32xf32> to vector<32x1xf32>
    %cst_16 = arith.constant 3.200000e+01 : f32
    %56 = vector.broadcast %cst_16 : f32 to vector<32x1xf32>
    %57 = arith.divf %55, %56 : vector<32x1xf32>
    %58 = vector.broadcast %57 : vector<32x1xf32> to vector<32x32xf32>
    %59 = arith.subf %53, %58 : vector<32x32xf32>
    %60 = arith.mulf %59, %59 : vector<32x32xf32>
    %cst_17 = arith.constant dense<0.000000e+00> : vector<32xf32>
    %61 = vector.multi_reduction <add>, %60, %cst_17 [1] : vector<32x32xf32> to vector<32xf32>
    %62 = vector.shape_cast %61 : vector<32xf32> to vector<32x1xf32>
    %cst_18 = arith.constant 3.200000e+01 : f32
    %63 = vector.broadcast %cst_18 : f32 to vector<32x1xf32>
    %64 = arith.divf %62, %63 : vector<32x1xf32>
    %cst_19 = arith.constant 9.99999974E-6 : f32
    %65 = vector.broadcast %cst_19 : f32 to vector<32x1xf32>
    %66 = arith.addf %64, %65 : vector<32x1xf32>
    %67 = math.rsqrt %66 : vector<32x1xf32>
    %68 = vector.broadcast %57 : vector<32x1xf32> to vector<32x32xf32>
    %69 = arith.subf %53, %68 : vector<32x32xf32>
    %70 = vector.broadcast %67 : vector<32x1xf32> to vector<32x32xf32>
    %71 = arith.mulf %69, %70 : vector<32x32xf32>
    %72 = vector.broadcast %22 : vector<1x32xf32> to vector<32x32xf32>
    %73 = arith.mulf %71, %72 : vector<32x32xf32>
    %74 = vector.broadcast %23 : vector<1x32xf32> to vector<32x32xf32>
    %75 = arith.addf %73, %74 : vector<32x32xf32>
    %cst_20 = arith.constant dense<0.000000e+00> : vector<32x128xf32>
    %76 = tpu.matmul %75, %16, %cst_20 {dimension_numbers = #tpu.dot_dimension_numbers<[1], [0], [0], [1], [0, 0, 1, 1], [], []>} : vector<32x32xf32>, vector<32x128xf32>, vector<32x128xf32> -> vector<32x128xf32>
    %77 = vector.broadcast %24 : vector<1x128xf32> to vector<32x128xf32>
    %78 = arith.addf %76, %77 : vector<32x128xf32>
    %cst_21 = arith.constant 0.000000e+00 : f32
    %79 = vector.broadcast %cst_21 : f32 to vector<32x128xf32>
    %80 = arith.maximumf %78, %79 : vector<32x128xf32>
    %cst_22 = arith.constant dense<0.000000e+00> : vector<32x32xf32>
    %81 = tpu.matmul %80, %18, %cst_22 {dimension_numbers = #tpu.dot_dimension_numbers<[1], [0], [0], [1], [0, 0, 1, 1], [], []>} : vector<32x128xf32>, vector<128x32xf32>, vector<32x32xf32> -> vector<32x32xf32>
    %82 = vector.broadcast %25 : vector<1x32xf32> to vector<32x32xf32>
    %83 = arith.addf %81, %82 : vector<32x32xf32>
    %84 = arith.addf %75, %83 : vector<32x32xf32>
    %cst_23 = arith.constant dense<0.000000e+00> : vector<32xf32>
    %85 = vector.multi_reduction <add>, %84, %cst_23 [1] : vector<32x32xf32> to vector<32xf32>
    %86 = vector.shape_cast %85 : vector<32xf32> to vector<32x1xf32>
    %cst_24 = arith.constant 3.200000e+01 : f32
    %87 = vector.broadcast %cst_24 : f32 to vector<32x1xf32>
    %88 = arith.divf %86, %87 : vector<32x1xf32>
    %89 = vector.broadcast %88 : vector<32x1xf32> to vector<32x32xf32>
    %90 = arith.subf %84, %89 : vector<32x32xf32>
    %91 = arith.mulf %90, %90 : vector<32x32xf32>
    %cst_25 = arith.constant dense<0.000000e+00> : vector<32xf32>
    %92 = vector.multi_reduction <add>, %91, %cst_25 [1] : vector<32x32xf32> to vector<32xf32>
    %93 = vector.shape_cast %92 : vector<32xf32> to vector<32x1xf32>
    %cst_26 = arith.constant 3.200000e+01 : f32
    %94 = vector.broadcast %cst_26 : f32 to vector<32x1xf32>
    %95 = arith.divf %93, %94 : vector<32x1xf32>
    %cst_27 = arith.constant 9.99999974E-6 : f32
    %96 = vector.broadcast %cst_27 : f32 to vector<32x1xf32>
    %97 = arith.addf %95, %96 : vector<32x1xf32>
    %98 = math.rsqrt %97 : vector<32x1xf32>
    %99 = vector.broadcast %88 : vector<32x1xf32> to vector<32x32xf32>
    %100 = arith.subf %84, %99 : vector<32x32xf32>
    %101 = vector.broadcast %98 : vector<32x1xf32> to vector<32x32xf32>
    %102 = arith.mulf %100, %101 : vector<32x32xf32>
    %103 = vector.broadcast %26 : vector<1x32xf32> to vector<32x32xf32>
    %104 = arith.mulf %102, %103 : vector<32x32xf32>
    %105 = vector.broadcast %27 : vector<1x32xf32> to vector<32x32xf32>
    %106 = arith.addf %104, %105 : vector<32x32xf32>
    %c224 = arith.constant 224 : index
    %c0_28 = arith.constant 0 : index
    %107 = vector.load %arg1[%c224, %c0_28] : memref<544x128xbf16, #tpu.memory_space<vmem>>, vector<32x96xbf16>
    %108 = arith.extf %107 : vector<32x96xbf16> to vector<32x96xf32>
    %c256 = arith.constant 256 : index
    %c0_29 = arith.constant 0 : index
    %109 = vector.load %arg1[%c256, %c0_29] : memref<544x128xbf16, #tpu.memory_space<vmem>>, vector<32x32xbf16>
    %110 = arith.extf %109 : vector<32x32xbf16> to vector<32x32xf32>
    %c288 = arith.constant 288 : index
    %c0_30 = arith.constant 0 : index
    %111 = vector.load %arg1[%c288, %c0_30] : memref<544x128xbf16, #tpu.memory_space<vmem>>, vector<32x128xbf16>
    %112 = arith.extf %111 : vector<32x128xbf16> to vector<32x128xf32>
    %c320 = arith.constant 320 : index
    %c0_31 = arith.constant 0 : index
    %113 = vector.load %arg1[%c320, %c0_31] : memref<544x128xbf16, #tpu.memory_space<vmem>>, vector<128x32xbf16>
    %114 = arith.extf %113 : vector<128x32xbf16> to vector<128x32xf32>
    %c8 = arith.constant 8 : index
    %c0_32 = arith.constant 0 : index
    %115 = vector.load %arg2[%c8, %c0_32] : memref<16x128xf32, #tpu.memory_space<vmem>>, vector<8x128xf32>
    %116 = vector.extract_strided_slice %115 {offsets = [0, 0], sizes = [1, 96], strides = [1, 1]} : vector<8x128xf32> to vector<1x96xf32>
    %117 = vector.extract_strided_slice %115 {offsets = [1, 0], sizes = [1, 32], strides = [1, 1]} : vector<8x128xf32> to vector<1x32xf32>
    %118 = vector.extract_strided_slice %115 {offsets = [2, 0], sizes = [1, 32], strides = [1, 1]} : vector<8x128xf32> to vector<1x32xf32>
    %119 = vector.extract_strided_slice %115 {offsets = [3, 0], sizes = [1, 32], strides = [1, 1]} : vector<8x128xf32> to vector<1x32xf32>
    %120 = vector.extract_strided_slice %115 {offsets = [4, 0], sizes = [1, 128], strides = [1, 1]} : vector<8x128xf32> to vector<1x128xf32>
    %121 = vector.extract_strided_slice %115 {offsets = [5, 0], sizes = [1, 32], strides = [1, 1]} : vector<8x128xf32> to vector<1x32xf32>
    %122 = vector.extract_strided_slice %115 {offsets = [6, 0], sizes = [1, 32], strides = [1, 1]} : vector<8x128xf32> to vector<1x32xf32>
    %123 = vector.extract_strided_slice %115 {offsets = [7, 0], sizes = [1, 32], strides = [1, 1]} : vector<8x128xf32> to vector<1x32xf32>
    %cst_33 = arith.constant dense<0.000000e+00> : vector<48x96xf32>
    %124 = tpu.matmul %10, %108, %cst_33 {dimension_numbers = #tpu.dot_dimension_numbers<[1], [0], [0], [1], [0, 0, 1, 1], [], []>} : vector<48x32xf32>, vector<32x96xf32>, vector<48x96xf32> -> vector<48x96xf32>
    %125 = vector.broadcast %116 : vector<1x96xf32> to vector<48x96xf32>
    %126 = arith.addf %124, %125 : vector<48x96xf32>
    %127 = vector.extract_strided_slice %126 {offsets = [0, 0], sizes = [48, 32], strides = [1, 1]} : vector<48x96xf32> to vector<48x32xf32>
    %128 = vector.shape_cast %127 : vector<48x32xf32> to vector<2x24x32xf32>
    %129 = vector.extract_strided_slice %126 {offsets = [0, 32], sizes = [48, 32], strides = [1, 1]} : vector<48x96xf32> to vector<48x32xf32>
    %130 = vector.shape_cast %129 : vector<48x32xf32> to vector<2x24x32xf32>
    %131 = vector.extract_strided_slice %126 {offsets = [0, 64], sizes = [48, 32], strides = [1, 1]} : vector<48x96xf32> to vector<48x32xf32>
    %132 = vector.shape_cast %131 : vector<48x32xf32> to vector<2x24x32xf32>
    "tpu.trace_start"() <{level = 10 : i32, message = "bqd,bkd->bqk"}> : () -> ()
    %cst_34 = arith.constant dense<0.000000e+00> : vector<2x24x24xf32>
    %133 = tpu.matmul %128, %130, %cst_34 {dimension_numbers = #tpu.dot_dimension_numbers<[2], [2], [1], [1], [0, 0, 0, 1, 1, 1], [0], [0]>} : vector<2x24x32xf32>, vector<2x24x32xf32>, vector<2x24x24xf32> -> vector<2x24x24xf32>
    "tpu.trace_stop"() : () -> ()
    %cst_35 = arith.constant dense<0xFF800000> : vector<2x24xf32>
    %134 = vector.multi_reduction <maximumf>, %133, %cst_35 [2] : vector<2x24x24xf32> to vector<2x24xf32>
    %135 = vector.shape_cast %134 : vector<2x24xf32> to vector<2x24x1xf32>
    %136 = vector.broadcast %135 : vector<2x24x1xf32> to vector<2x24x24xf32>
    %137 = arith.subf %133, %136 : vector<2x24x24xf32>
    %138 = math.exp %137 : vector<2x24x24xf32>
    %cst_36 = arith.constant dense<0.000000e+00> : vector<2x24xf32>
    %139 = vector.multi_reduction <add>, %138, %cst_36 [2] : vector<2x24x24xf32> to vector<2x24xf32>
    %140 = vector.shape_cast %139 : vector<2x24xf32> to vector<2x24x1xf32>
    %141 = tpu.reciprocal %140 {approx = true} : vector<2x24x1xf32> -> vector<2x24x1xf32>
    %142 = vector.broadcast %141 : vector<2x24x1xf32> to vector<2x24x24xf32>
    %143 = arith.mulf %138, %142 : vector<2x24x24xf32>
    "tpu.trace_start"() <{level = 10 : i32, message = "bqk,bkd->bqd"}> : () -> ()
    %cst_37 = arith.constant dense<0.000000e+00> : vector<2x24x32xf32>
    %144 = tpu.matmul %143, %132, %cst_37 {dimension_numbers = #tpu.dot_dimension_numbers<[2], [1], [1], [2], [0, 0, 0, 1, 1, 2], [0], [0]>} : vector<2x24x24xf32>, vector<2x24x32xf32>, vector<2x24x32xf32> -> vector<2x24x32xf32>
    "tpu.trace_stop"() : () -> ()
    %145 = vector.shape_cast %144 : vector<2x24x32xf32> to vector<48x32xf32>
    %cst_38 = arith.constant dense<0.000000e+00> : vector<48x32xf32>
    %146 = tpu.matmul %145, %110, %cst_38 {dimension_numbers = #tpu.dot_dimension_numbers<[1], [0], [0], [1], [0, 0, 1, 1], [], []>} : vector<48x32xf32>, vector<32x32xf32>, vector<48x32xf32> -> vector<48x32xf32>
    %147 = vector.broadcast %117 : vector<1x32xf32> to vector<48x32xf32>
    %148 = arith.addf %146, %147 : vector<48x32xf32>
    %149 = arith.addf %10, %148 : vector<48x32xf32>
    %cst_39 = arith.constant dense<0.000000e+00> : vector<48xf32>
    %150 = vector.multi_reduction <add>, %149, %cst_39 [1] : vector<48x32xf32> to vector<48xf32>
    %151 = vector.shape_cast %150 : vector<48xf32> to vector<48x1xf32>
    %cst_40 = arith.constant 3.200000e+01 : f32
    %152 = vector.broadcast %cst_40 : f32 to vector<48x1xf32>
    %153 = arith.divf %151, %152 : vector<48x1xf32>
    %154 = vector.broadcast %153 : vector<48x1xf32> to vector<48x32xf32>
    %155 = arith.subf %149, %154 : vector<48x32xf32>
    %156 = arith.mulf %155, %155 : vector<48x32xf32>
    %cst_41 = arith.constant dense<0.000000e+00> : vector<48xf32>
    %157 = vector.multi_reduction <add>, %156, %cst_41 [1] : vector<48x32xf32> to vector<48xf32>
    %158 = vector.shape_cast %157 : vector<48xf32> to vector<48x1xf32>
    %cst_42 = arith.constant 3.200000e+01 : f32
    %159 = vector.broadcast %cst_42 : f32 to vector<48x1xf32>
    %160 = arith.divf %158, %159 : vector<48x1xf32>
    %cst_43 = arith.constant 9.99999974E-6 : f32
    %161 = vector.broadcast %cst_43 : f32 to vector<48x1xf32>
    %162 = arith.addf %160, %161 : vector<48x1xf32>
    %163 = math.rsqrt %162 : vector<48x1xf32>
    %164 = vector.broadcast %153 : vector<48x1xf32> to vector<48x32xf32>
    %165 = arith.subf %149, %164 : vector<48x32xf32>
    %166 = vector.broadcast %163 : vector<48x1xf32> to vector<48x32xf32>
    %167 = arith.mulf %165, %166 : vector<48x32xf32>
    %168 = vector.broadcast %118 : vector<1x32xf32> to vector<48x32xf32>
    %169 = arith.mulf %167, %168 : vector<48x32xf32>
    %170 = vector.broadcast %119 : vector<1x32xf32> to vector<48x32xf32>
    %171 = arith.addf %169, %170 : vector<48x32xf32>
    %cst_44 = arith.constant dense<0.000000e+00> : vector<48x128xf32>
    %172 = tpu.matmul %171, %112, %cst_44 {dimension_numbers = #tpu.dot_dimension_numbers<[1], [0], [0], [1], [0, 0, 1, 1], [], []>} : vector<48x32xf32>, vector<32x128xf32>, vector<48x128xf32> -> vector<48x128xf32>
    %173 = vector.broadcast %120 : vector<1x128xf32> to vector<48x128xf32>
    %174 = arith.addf %172, %173 : vector<48x128xf32>
    %cst_45 = arith.constant 0.000000e+00 : f32
    %175 = vector.broadcast %cst_45 : f32 to vector<48x128xf32>
    %176 = arith.maximumf %174, %175 : vector<48x128xf32>
    %cst_46 = arith.constant dense<0.000000e+00> : vector<48x32xf32>
    %177 = tpu.matmul %176, %114, %cst_46 {dimension_numbers = #tpu.dot_dimension_numbers<[1], [0], [0], [1], [0, 0, 1, 1], [], []>} : vector<48x128xf32>, vector<128x32xf32>, vector<48x32xf32> -> vector<48x32xf32>
    %178 = vector.broadcast %121 : vector<1x32xf32> to vector<48x32xf32>
    %179 = arith.addf %177, %178 : vector<48x32xf32>
    %180 = arith.addf %171, %179 : vector<48x32xf32>
    %cst_47 = arith.constant dense<0.000000e+00> : vector<48xf32>
    %181 = vector.multi_reduction <add>, %180, %cst_47 [1] : vector<48x32xf32> to vector<48xf32>
    %182 = vector.shape_cast %181 : vector<48xf32> to vector<48x1xf32>
    %cst_48 = arith.constant 3.200000e+01 : f32
    %183 = vector.broadcast %cst_48 : f32 to vector<48x1xf32>
    %184 = arith.divf %182, %183 : vector<48x1xf32>
    %185 = vector.broadcast %184 : vector<48x1xf32> to vector<48x32xf32>
    %186 = arith.subf %180, %185 : vector<48x32xf32>
    %187 = arith.mulf %186, %186 : vector<48x32xf32>
    %cst_49 = arith.constant dense<0.000000e+00> : vector<48xf32>
    %188 = vector.multi_reduction <add>, %187, %cst_49 [1] : vector<48x32xf32> to vector<48xf32>
    %189 = vector.shape_cast %188 : vector<48xf32> to vector<48x1xf32>
    %cst_50 = arith.constant 3.200000e+01 : f32
    %190 = vector.broadcast %cst_50 : f32 to vector<48x1xf32>
    %191 = arith.divf %189, %190 : vector<48x1xf32>
    %cst_51 = arith.constant 9.99999974E-6 : f32
    %192 = vector.broadcast %cst_51 : f32 to vector<48x1xf32>
    %193 = arith.addf %191, %192 : vector<48x1xf32>
    %194 = math.rsqrt %193 : vector<48x1xf32>
    %195 = vector.broadcast %184 : vector<48x1xf32> to vector<48x32xf32>
    %196 = arith.subf %180, %195 : vector<48x32xf32>
    %197 = vector.broadcast %194 : vector<48x1xf32> to vector<48x32xf32>
    %198 = arith.mulf %196, %197 : vector<48x32xf32>
    %199 = vector.broadcast %122 : vector<1x32xf32> to vector<48x32xf32>
    %200 = arith.mulf %198, %199 : vector<48x32xf32>
    %201 = vector.broadcast %123 : vector<1x32xf32> to vector<48x32xf32>
    %202 = arith.addf %200, %201 : vector<48x32xf32>
    %203 = vector.shape_cast %106 : vector<32x32xf32> to vector<2x16x32xf32>
    %cst_52 = arith.constant dense<0xFF800000> : vector<2x32xf32>
    %204 = vector.multi_reduction <maximumf>, %203, %cst_52 [1] : vector<2x16x32xf32> to vector<2x32xf32>
    %205 = vector.shape_cast %202 : vector<48x32xf32> to vector<2x24x32xf32>
    %cst_53 = arith.constant dense<0xFF800000> : vector<2x32xf32>
    %206 = vector.multi_reduction <maximumf>, %205, %cst_53 [1] : vector<2x24x32xf32> to vector<2x32xf32>
    %c0_54 = arith.constant 0 : index
    %c0_55 = arith.constant 0 : index
    %207 = vector.load %arg3[%c0_54, %c0_55] : memref<80x512xbf16, #tpu.memory_space<vmem>>, vector<32x512xbf16>
    %208 = arith.extf %207 : vector<32x512xbf16> to vector<32x512xf32>
    %c32_56 = arith.constant 32 : index
    %c0_57 = arith.constant 0 : index
    %209 = vector.load %arg3[%c32_56, %c0_57] : memref<80x512xbf16, #tpu.memory_space<vmem>>, vector<32x512xbf16>
    %210 = arith.extf %209 : vector<32x512xbf16> to vector<32x512xf32>
    %c64_58 = arith.constant 64 : index
    %c0_59 = arith.constant 0 : index
    %211 = vector.load %arg3[%c64_58, %c0_59] : memref<80x512xbf16, #tpu.memory_space<vmem>>, vector<16x512xbf16>
    %212 = arith.extf %211 : vector<16x512xbf16> to vector<16x512xf32>
    %213 = vector.extract_strided_slice %212 {offsets = [0, 0], sizes = [8, 512], strides = [1, 1]} : vector<16x512xf32> to vector<8x512xf32>
    %214 = vector.extract_strided_slice %212 {offsets = [8, 0], sizes = [1, 512], strides = [1, 1]} : vector<16x512xf32> to vector<1x512xf32>
    %215 = vector.extract_strided_slice %212 {offsets = [9, 0], sizes = [1, 8], strides = [1, 1]} : vector<16x512xf32> to vector<1x8xf32>
    %cst_60 = arith.constant dense<0.000000e+00> : vector<2x512xf32>
    %216 = tpu.matmul %204, %208, %cst_60 {dimension_numbers = #tpu.dot_dimension_numbers<[1], [0], [0], [1], [0, 0, 1, 1], [], []>} : vector<2x32xf32>, vector<32x512xf32>, vector<2x512xf32> -> vector<2x512xf32>
    %cst_61 = arith.constant dense<0.000000e+00> : vector<2x512xf32>
    %217 = tpu.matmul %206, %210, %cst_61 {dimension_numbers = #tpu.dot_dimension_numbers<[1], [0], [0], [1], [0, 0, 1, 1], [], []>} : vector<2x32xf32>, vector<32x512xf32>, vector<2x512xf32> -> vector<2x512xf32>
    %218 = arith.addf %216, %217 : vector<2x512xf32>
    %219 = vector.broadcast %214 : vector<1x512xf32> to vector<2x512xf32>
    %220 = arith.addf %218, %219 : vector<2x512xf32>
    %cst_62 = arith.constant 0.000000e+00 : f32
    %221 = vector.broadcast %cst_62 : f32 to vector<2x512xf32>
    %222 = arith.maximumf %220, %221 : vector<2x512xf32>
    %cst_63 = arith.constant dense<0.000000e+00> : vector<2x8xf32>
    %223 = tpu.matmul %222, %213, %cst_63 {dimension_numbers = #tpu.dot_dimension_numbers<[1], [1], [0], [0], [0, 0, 1, 0], [], []>} : vector<2x512xf32>, vector<8x512xf32>, vector<2x8xf32> -> vector<2x8xf32>
    %224 = vector.broadcast %215 : vector<1x8xf32> to vector<2x8xf32>
    %225 = arith.addf %223, %224 : vector<2x8xf32>
    %226 = vector.shape_cast %225 : vector<2x8xf32> to vector<2x1x8xf32>
    %c0_64 = arith.constant 0 : index
    %c0_65 = arith.constant 0 : index
    %c0_66 = arith.constant 0 : index
    %227 = vector.load %arg4[%c0_64, %c0_65, %c0_66] : memref<2x1x8xf32, #tpu.memory_space<vmem>>, vector<2x1x8xf32>
    tpu.vector_store %arg4[%c0_64, %c0_65, %c0_66], %226 {strides = array<i32>} : memref<2x1x8xf32, #tpu.memory_space<vmem>>, vector<2x1x8xf32>,
    return
  }
}

</mosaic_0001>

<bundles_post_ra>
// kernel: trans_forward.1
= control target key start
LH: loop header
LB: loop body
LE: loop exit
PB: predicated region body
PF: predicated region fallthrough
CT: control target
= control target key end

     0   :  { %9 = vsyncpa [#allocation3], 0  ;;  %s4525_s0 = inlined_call_operand.vmem [shape: s32[80,1], index: 0, kind: input, shape index: {}]   ;;  %s4526_s1 = inlined_call_operand.hbm [shape: bf16[544,128], index: 1, kind: input, shape index: {}]   ;;  %s4527_s2 = inlined_call_operand.vmem [shape: f32[16,128], index: 2, kind: input, shape index: {}]   ;;  %s4528_s3 = inlined_call_operand.hbm [shape: bf16[80,512], index: 3, kind: input, shape index: {}]   ;;  %s4529_s4 = inlined_call_operand.hbm [shape: f32[2,1,8], index: 4, kind: output, shape index: {}]  }
   0x1   :  { %10 = vsyncpa [#allocation6], 0 }
   0x2   :  { %11 = vsyncpa [#allocation4], 0  ;;  %s3884_s15 = smov [#allocation2]  }
   0x3   :  { %s19_s16 = sshll.u32 %s3884_s15, 4  ;;  %s20_s16 = int_to_ptr.vmem [resolvable:$true] %s19_s16 }
   0x4   :  { %s3826_s17 = scalar_lea.vmem %s20_s16, 4352  ;;  %p3831_p1 = scmp.lt.s32.totalorder %s20_s16, %s20_s16 }
   0x5   :  { %p3827_p0 = scmp.ne.s32.totalorder %s20_s16, %s3826_s17  ;;  %p3832_p2 = scmp.lt.s32.totalorder %s3826_s17, %s3826_s17 }
   0x7   :  { %p3833_p3 = por %p3832_p2, %p3831_p1 }
   0x9   :  { %p3834_p4 = pnand %p3833_p3, %p3827_p0 }
   0xb   :  { %3837 = shalt.err (!%p3834_p4)
}
   0xc   :  { %s3885_s18 = smov 64   ;;  %s3886_s19 = smov 4  }
   0xd   :  { %25 = dma.hbm_to_vmem [thread:$0]  %s4526_s1, 4352, %s20_s16, [#allocation3], %s3885_s18, %s3885_s18, %s3886_s19  }
   0xe   :  { %s3887_s22 = smov [#allocation5]  }
   0xf   :  { %s33_s23 = sshll.u32 %s3887_s22, 4  ;;  %s34_s23 = int_to_ptr.vmem [resolvable:$true] %s33_s23 }
  0x10   :  { %s3846_s24 = scalar_lea.vmem %s34_s23, 2560  ;;  %p3851_p6 = scmp.lt.s32.totalorder %s34_s23, %s34_s23 }
  0x11   :  { %p3847_p5 = scmp.ne.s32.totalorder %s34_s23, %s3846_s24  ;;  %p3852_p7 = scmp.lt.s32.totalorder %s3846_s24, %s3846_s24 }
  0x13   :  { %p3853_p8 = por %p3852_p7, %p3851_p6 }
  0x15   :  { %p3854_p9 = pnand %p3853_p8, %p3847_p5 }
  0x17   :  { %3857 = shalt.err (!%p3854_p9)
}
  0x18   :  { %s3888_s25 = smov 256   ;;  %s3889_s26 = smov 16  }
  0x19   :  { %39 = dma.hbm_to_vmem [thread:$0]  %s4528_s3, 2560, %s34_s23, [#allocation6], %s3888_s25, %s3888_s25, %s3889_s26  }
  0x1a   :  { %3878 = dma.done.wait [#allocation3], 4352  }
  0x1b   :  { %3879 = vsyncadd [#allocation3], 4294962944 }
  0x1c   :  { %3880 = dma.done.wait [#allocation6], 2560  }
  0x1d   :  { %3881 = vsyncadd [#allocation6], 4294964736  ;;  %v3890_v0 = vmov 0   ;;  %v3891_v1 = vmov 0.0   ;;  %v47_v2 = vld [vmem:[%s4525_s0] sm:$0xff]  ;;  %v48_v3 = vld [vmem:[%s4525_s0 + $0x8] sm:$0xff]  ;;  %v57_v15 = vlaneseq }
  0x1e   :  { %3728 = vset.pattern.permute.xlu0 %v3890_v0  ;;  %3729 = vset.pattern.permute.xlu1 %v3890_v0  ;;  %v49_v4 = vld [vmem:[%s4525_s0 + $0x10] sm:$0xff]  ;;  %v50_v5 = vld [vmem:[%s4525_s0 + $0x18] sm:$0xff]  ;;  %v3730_v6 = vld [vmem:[#allocation2 + $0x108] sm:$0xff]   ;;  %vm3892_vm0 = vmmov 0   ;;  %vm172_vm3 = vcmask 785408   ;;  %vm322_vm6 = vcmask 261120  }
  0x1f   :  { %3423 = vmatprep.subr.bf16.mxu0 %v3891_v1  ;;  %60 = vperm.xlu0 %3728, %v47_v2   ;;  %v3731_v7 = vld [vmem:[#allocation2 + $0x100] sm:$0xff]   ;;  %v3732_v8 = vld [vmem:[#allocation2 + $0xf8] sm:$0xff]   ;;  %v3733_v9 = vld [vmem:[#allocation2 + $0xf0] sm:$0xff]   ;;  %v3951_v16 = vand.u32 127, %v57_v15  ;;  %v3983_v38 = vshrl.u32 %v57_v15, 7  ;;  %s3893_s11 = smov 96  }
  0x20   :  { %66 = vperm.xlu1 %3729, %v49_v4   ;;  %3424 = vmatpush3.bf16.msra.mxu0 %v3730_v6  ;;  %v3249_v10 = vld [vmem:[#allocation2 + $0x8] sm:$0xff]   ;;  %v3735_v14 = vld [vmem:[#allocation2 + $0xe0] sm:$0xff]   ;;  %vm598_vm7 = vcmask 130048   ;;  %vm1633_vm14 = vcmask 195584   ;;  %vm2545_vm15 = vcmask 1041409  }
  0x21   :  { %3435 = vmatprep.mubr.msk.bf16.mxu0 %vm3892_vm0, %v3891_v1  ;;  %3425 = vmatprep.subr.bf16.mxu0 %v3891_v1  ;;  %v3143_v11 = vunpack.c.l.bf16 %v3249_v10  ;;  %v3144_v12 = vunpack.c.h.bf16 %v3249_v10  ;;  %v3734_v13 = vld [vmem:[#allocation2 + $0xe8] sm:$0xff]   ;;  %v3138_v27 = vld [vmem:[#allocation2] sm:$0xff]   ;;  %v3986_v39 = vsub.s32 0, %v3983_v38 }
  0x22   :  { %v3140_v28 = vunpack.c.h.bf16 %v3138_v27  ;;  %v3139_v29 = vunpack.c.l.bf16 %v3138_v27  ;;  %v3991_v40 = vld [vmem:[%s4527_s2] sm:$0xff] }
  0x23   :  { %63 = vperm.xlu0 %3728, %v48_v3   ;;  %3455 = vmatprep.subr.mxu1 %v3144_v12  ;;  %v321_v41 = vrot.slane %v3991_v40, %v3986_v39 }
  0x24   :  { %69 = vperm.xlu1 %3729, %v50_v5   ;;  %3426 = vmatpush3.bf16.msra.mxu0 %v3731_v7 }
  0x25   :  { %3427 = vmatprep.subr.bf16.mxu0 %v3891_v1  ;;  %3456 = vmatpush3.msra.mxu1 %v3144_v12 }
  0x26   :  { %3457 = vmatprep.subr.mxu1 %v3143_v11 }
  0x27   :  { %3458 = vmatpush3.msra.mxu1 %v3143_v11 }
  0x28   :  { %3428 = vmatpush3.bf16.msra.mxu0 %v3732_v8  ;;  %3459 = vmatprep.subr.mxu1 %v3140_v28 }
  0x29   :  { %3429 = vmatprep.subr.bf16.mxu0 %v3891_v1  ;;  %3460 = vmatpush3.msra.mxu1 %v3140_v28 }
  0x2a   :  { %3461 = vmatprep.subr.mxu1 %v3139_v29 }
  0x2b   :  { %3462 = vmatpush3.msra.mxu1 %v3139_v29 }
  0x2c   :  { %3430 = vmatpush3.bf16.msra.mxu0 %v3733_v9 }
  0x2d   :  { %3431 = vmatprep.subr.bf16.mxu0 %v3891_v1 }
  0x30   :  { %3432 = vmatpush3.bf16.msra.mxu0 %v3734_v13 }
  0x31   :  { %3433 = vmatprep.subr.bf16.mxu0 %v3891_v1 }
  0x34   :  { %3434 = vmatpush3.bf16.msra.mxu0 %v3735_v14 }
  0x9a   :  { %v61_v17 = vpop.permute.xlu0 %60 }
  0x9b   :  { %v67_v18 = vpop.permute.xlu1 %66  ;;  %vm89_vm1 = vcmp.eq.s32.totalorder %v61_v17, %v3951_v16 }
  0x9c   :  { %v3052_v21 = vsel %vm89_vm1, 1.0, %v3891_v1  ;;  %vm91_vm4 = vcmp.eq.s32.totalorder %v67_v18, %v3951_v16 }
  0x9d   :  { %v3054_v24 = vsel %vm91_vm4, 1.0, %v3891_v1 }
  0x9e   :  { %v64_v19 = vpop.permute.xlu0 %63 }
  0x9f   :  { %v70_v20 = vpop.permute.xlu1 %69  ;;  %vm90_vm2 = vcmp.eq.s32.totalorder %v64_v19, %v3951_v16  ;;  %v51_v19 = vld [vmem:[%s4525_s0 + $0x20] sm:$0xff] }
  0xa0   :  { %v3053_v22 = vsel %vm90_vm2, 1.0, %v3891_v1  ;;  %vm92_vm5 = vcmp.eq.s32.totalorder %v70_v20, %v3951_v16  ;;  %v53_v20 = vld [vmem:[%s4525_s0 + $0x30] sm:$0xff] }
  0xa1   :  { %v119_v23 = vpack.c.bf16 %v3053_v22, %v3052_v21  ;;  %v3055_v25 = vsel %vm92_vm5, 1.0, %v3891_v1  ;;  %v55_v21 = vld [vmem:[%s4525_s0 + $0x40] sm:$0xff] }
  0xa2   :  { %v120_v26 = vpack.c.bf16 %v3055_v25, %v3054_v24  ;;  %v52_v24 = vld [vmem:[%s4525_s0 + $0x28] sm:$0xff]  ;;  %v54_v25 = vld [vmem:[%s4525_s0 + $0x38] sm:$0xff] }
  0xa3   :  { %3436 = vmatmul.mubr.msk.bf16.vlgmr.msra.gmra.mxu0 %vm172_vm3, %v119_v23 }
  0xa4   :  { %3439 = vmatprep.mubr.msk.bf16.mxu0 %vm3892_vm0, %v3891_v1 }
  0xab   :  { %3440 = vmatmul.mubr.msk.bf16.gmra.mxu0 %vm172_vm3, %v120_v26  ;;  %v56_v26 = vld [vmem:[%s4525_s0 + $0x48] sm:$0xff] }
  0xac   :  { %3443 = vmatprep.mubr.msk.bf16.mxu0 %vm3892_vm0, %v3891_v1 }
 0x163   :  { %v3967_v30 = vpop.f32.mrf.mxu0 }
 0x164   :  { %3463 = vmatprep.mubr.msk.f32.mxu1 %vm322_vm6, %v3967_v30 }
 0x165   :  { %v3437_v31 = vpop.f32.mrf.mxu0 }
 0x167   :  { %v3971_v32 = vpop.f32.mrf.mxu0 }
 0x168   :  { %3464 = vmatmul.mubr.msk.f32.vlgmr.msra.gmra.mxu1 %vm322_vm6, %v3971_v32 }
 0x169   :  { %v3438_v33 = vpop.f32.mrf.mxu0 }
 0x16b   :  { %v3975_v34 = vpop.f32.mrf.mxu0 }
 0x16c   :  { %3466 = vmatprep.mubr.msk.f32.mxu1 %vm322_vm6, %v3975_v34 }
 0x16d   :  { %v3441_v35 = vpop.f32.mrf.mxu0 }
 0x16f   :  { %v3979_v36 = vpop.f32.mrf.mxu0 }
 0x170   :  { %3467 = vmatmul.mubr.msk.f32.gmra.mxu1 %vm322_vm6, %v3979_v36 }
 0x171   :  { %v3442_v37 = vpop.f32.mrf.mxu0 }
 0x228   :  { %v3465_v42 = vpop.f32.mrf.mxu1 }
 0x229   :  { %v407_v43 = vadd.f32 %v3465_v42, %v321_v41 }
 0x22a   :  { %v401_v44 = vpop.f32.mrf.mxu1 }
 0x22b   :  { %v3995_v45 = vadd.f32 %v401_v44, %v321_v41  ;;  %424 = vrot.lane.b32.xlu0 %v407_v43, %s3893_s11  ;;  %v3251_v44 = vld [vmem:[#allocation2 + $0x18] sm:$0xff]  }
 0x22d   :  { %422 = vrot.lane.b32.xlu1 %v3995_v45, %s3893_s11  ;;  %3473 = vmatprep.mubr.msk.f32.mxu1 %vm322_vm6, %v3995_v45 }
 0x230   :  { %v3468_v46 = vpop.f32.mrf.mxu1 }
 0x231   :  { %v417_v47 = vadd.f32 %v3468_v46, %v321_v41 }
 0x232   :  { %v411_v48 = vpop.f32.mrf.mxu1 }
 0x233   :  { %513 = vrot.lane.b32.xlu0 %v417_v47, %s3893_s11  ;;  %v4003_v49 = vadd.f32 %v411_v48, %v321_v41 }
 0x235   :  { %511 = vrot.lane.b32.xlu1 %v4003_v49, %s3893_s11 }
 0x29d   :  { %v425_v50 = vpop.permute.xlu0 %424 }
 0x29e   :  { %3469 = vmatprep.subr.msk.mxu1 %vm322_vm6, %v425_v50 }
 0x29f   :  { %3470 = vmatpush3.xpose.msk.msra.mxu1 %vm322_vm6, %v425_v50  ;;  %v423_v51 = vpop.permute.xlu1 %422 }
 0x2a0   :  { %3471 = vmatprep.subr.msk.mxu1 %vm322_vm6, %v423_v51 }
 0x2a3   :  { %3472 = vmatpush3.xpose.msk.msra.mxu1 %vm322_vm6, %v423_v51 }
 0x2a5   :  { %v514_v52 = vpop.permute.xlu0 %513 }
 0x2a6   :  { %3474 = vmatmul.mubr.msk.f32.vlgmr.msra.gmra.mxu1 %vm322_vm6, %v407_v43  ;;  %3476 = vmatprep.subr.msk.mxu1 %vm322_vm6, %v514_v52 }
 0x2a7   :  { %3477 = vmatpush3.xpose.msk.msra.mxu1 %vm322_vm6, %v514_v52  ;;  %3480 = vmatprep.mubr.msk.f32.mxu1 %vm322_vm6, %v4003_v49  ;;  %v512_v53 = vpop.permute.xlu1 %511 }
 0x2a8   :  { %3478 = vmatprep.subr.msk.mxu1 %vm322_vm6, %v512_v53 }
 0x2ab   :  { %3479 = vmatpush3.xpose.msk.msra.mxu1 %vm322_vm6, %v512_v53 }
 0x2ae   :  { %3481 = vmatmul.mubr.msk.f32.vlgmr.msra.gmra.mxu1 %vm322_vm6, %v417_v47 }
 0x366   :  { %v3475_v54 = vpop.f32.mrf.mxu1 }
 0x367   :  { %v602_v55 = vsel %vm598_vm7, %v3475_v54, -inf }
 0x368   :  { %v500_v56 = vpop.f32.mrf.mxu1  ;;  %603 = vmax.xlane.f32.xlu1 %v602_v55 }
 0x369   :  { %v599_v57 = vsel %vm598_vm7, %v500_v56, -inf }
 0x36a   :  { %600 = vmax.xlane.f32.xlu0 %v599_v57 }
 0x36e   :  { %v3482_v58 = vpop.f32.mrf.mxu1 }
 0x36f   :  { %v608_v61 = vsel %vm598_vm7, %v3482_v58, -inf }
 0x370   :  { %v589_v59 = vpop.f32.mrf.mxu1 }
 0x371   :  { %v605_v60 = vsel %vm598_vm7, %v589_v59, -inf }
 0x372   :  { %606 = vmax.xlane.f32.xlu0 %v605_v60 }
 0x376   :  { %609 = vmax.xlane.f32.xlu0 %v608_v61 }
 0x379   :  { %645 = vrot.lane.b32.xlu1 %v407_v43, %s3885_s18 }
 0x3f1   :  { %v604_v62 = vpop.xlane.xlu1 %603 }
 0x3f2   :  { %v612_v63 = vsub.f32 %v3475_v54, %v604_v62 }
 0x3f3   :  { %v601_v0 = vpop.xlane.xlu0 %600 }
 0x3f4   :  { %v617_v2 = vmul.f32 1.442695, %v612_v63  ;;  %v611_v3 = vsub.f32 %v500_v56, %v601_v0 }
 0x3f5   :  { %v646_v4 = vpop.permute.xlu1 %645 }
 0x3f6   :  { %3736 = vpow2.f32 %v617_v2  ;;  %v615_v5 = vmul.f32 1.442695, %v611_v3  ;;  %3483 = vmatprep.subr.mxu1 %v646_v4 }
 0x3f7   :  { %3484 = vmatpush3.msra.mxu1 %v646_v4  ;;  %v3250_v4 = vld [vmem:[#allocation2 + $0x10] sm:$0xff]  }
 0x3f8   :  { %3738 = vpow2.f32 %v615_v5  ;;  %v3148_v5 = vunpack.c.h.bf16 %v3250_v4 }
 0x3fb   :  { %v607_v6 = vpop.xlane.xlu0 %606 }
 0x3fc   :  { %v613_v17 = vsub.f32 %v589_v59, %v607_v6  ;;  %v3151_v59 = vunpack.c.l.bf16 %v3251_v44  ;;  %v3147_v6 = vunpack.c.l.bf16 %v3250_v4 }
 0x3fe   :  { %v619_v18 = vmul.f32 1.442695, %v613_v17 }
 0x3ff   :  { %v610_v7 = vpop.xlane.xlu0 %609 }
 0x400   :  { %v614_v8 = vsub.f32 %v3482_v58, %v610_v7 }
 0x402   :  { %v621_v9 = vmul.f32 1.442695, %v614_v8 }
 0x403   :  { %v3737_v10 = vpop.eup %3736 }
 0x404   :  { %3740 = vpow2.f32 %v621_v9  ;;  %v626_v11 = vsel %vm598_vm7, %v3737_v10, 0.0 }
 0x405   :  { %v3739_v12 = vpop.eup %3738  ;;  %627 = vadd.xlane.f32.xlu0 %v626_v11  ;;  %3742 = vpow2.f32 %v619_v18 }
 0x406   :  { %v623_v13 = vsel %vm598_vm7, %v3739_v12, 0.0 }
 0x407   :  { %624 = vadd.xlane.f32.xlu1 %v623_v13 }
 0x411   :  { %v4026_v14 = vpop.eup %3740 }
 0x412   :  { %v632_v15 = vsel %vm598_vm7, %v4026_v14, 0.0  ;;  %v3743_v22 = vpop.eup %3742 }
 0x413   :  { %633 = vadd.xlane.f32.xlu0 %v632_v15  ;;  %v629_v23 = vsel %vm598_vm7, %v3743_v22, 0.0 }
 0x418   :  { %732 = vrot.lane.b32.xlu1 %v417_v47, %s3885_s18 }
 0x429   :  { %643 = vrot.lane.b32.xlu0 %v3995_v45, %s3885_s18  ;;  %v3152_v45 = vunpack.c.h.bf16 %v3251_v44 }
 0x42d   :  { %72 = vperm.xlu0 %3728, %v51_v19  }
 0x431   :  { %78 = vperm.xlu0 %3728, %v53_v20  }
 0x435   :  { %84 = vperm.xlu0 %3728, %v55_v21  }
 0x43c   :  { %630 = vadd.xlane.f32.xlu1 %v629_v23  ;;  %v4095_v23 = vsub.s32 1, %v3983_v38 }
 0x44d   :  { %730 = vrot.lane.b32.xlu1 %v4003_v49, %s3885_s18 }
 0x451   :  { %75 = vperm.xlu1 %3729, %v52_v24   ;;  %v820_v24 = vrot.slane %v3991_v40, %v4095_v23 }
 0x455   :  { %81 = vperm.xlu1 %3729, %v54_v25  }
 0x459   :  { %87 = vperm.xlu1 %3729, %v56_v26  }
 0x48e   :  { %v628_v27 = vpop.xlane.xlu0 %627 }
 0x48f   :  { %3744 = vrcp.f32 %v628_v27 }
 0x490   :  { %v625_v28 = vpop.xlane.xlu1 %624 }
 0x491   :  { %3746 = vrcp.f32 %v625_v28 }
 0x494   :  { %v733_v42 = vpop.permute.xlu1 %732 }
 0x49c   :  { %v634_v29 = vpop.xlane.xlu0 %633  ;;  %v3745_v31 = vpop.eup %3744 }
 0x49d   :  { %v640_v41 = vmul.f32 %v3745_v31, %v3737_v10  ;;  %3748 = vrcp.f32 %v634_v29 }
 0x49e   :  { %v3747_v33 = vpop.eup %3746 }
 0x49f   :  { %v639_v35 = vmul.f32 %v3747_v33, %v3739_v12 }
 0x4a0   :  { %v644_v37 = vpop.permute.xlu0 %643 }
 0x4a1   :  { %3485 = vmatprep.subr.mxu1 %v644_v37  ;;  %3487 = vmatprep.mubr.msk.f32.mxu1 %vm598_vm7, %v639_v35 }
 0x4a2   :  { %3486 = vmatpush3.msra.mxu1 %v644_v37 }
 0x4a3   :  { %3488 = vmatmul.mubr.msk.f32.vlgmr.msra.gmra.mxu1 %vm598_vm7, %v640_v41  ;;  %3490 = vmatprep.subr.mxu1 %v733_v42 }
 0x4a4   :  { %3491 = vmatpush3.msra.mxu1 %v733_v42 }
 0x4a8   :  { %v73_v46 = vpop.permute.xlu0 %72 }
 0x4a9   :  { %vm93_vm8 = vcmp.eq.s32.totalorder %v73_v46, %v3951_v16 }
 0x4aa   :  { %v3056_v49 = vsel %vm93_vm8, 1.0, %v3891_v1  ;;  %v3749_v54 = vpop.eup %3748 }
 0x4ab   :  { %v642_v58 = vmul.f32 %v3749_v54, %v4026_v14  ;;  %v3253_v54 = vld [vmem:[#allocation2 + $0x28] sm:$0xff]  }
 0x4ac   :  { %v79_v52 = vpop.permute.xlu0 %78 }
 0x4ad   :  { %vm95_vm11 = vcmp.eq.s32.totalorder %v79_v52, %v3951_v16 }
 0x4ae   :  { %v3058_v60 = vsel %vm95_vm11, 1.0, %v3891_v1 }
 0x4b0   :  { %v85_v63 = vpop.permute.xlu0 %84 }
 0x4b1   :  { %vm97_vm13 = vcmp.eq.s32.totalorder %v85_v63, %v3951_v16 }
 0x4b2   :  { %v3060_v2 = vsel %vm97_vm13, 1.0, %v3891_v1 }
 0x4c5   :  { %v631_v43 = vpop.xlane.xlu1 %630 }
 0x4c6   :  { %3750 = vrcp.f32 %v631_v43 }
 0x4c9   :  { %v731_v47 = vpop.permute.xlu1 %730 }
 0x4ca   :  { %3492 = vmatprep.subr.mxu1 %v731_v47 }
 0x4cb   :  { %3493 = vmatpush3.msra.mxu1 %v731_v47 }
 0x4cc   :  { %3497 = vmatprep.subr.mxu1 %v3152_v45 }
 0x4cd   :  { %v76_v48 = vpop.permute.xlu1 %75 }
 0x4ce   :  { %vm94_vm9 = vcmp.eq.s32.totalorder %v76_v48, %v3951_v16 }
 0x4cf   :  { %v3057_v50 = vsel %vm94_vm9, 1.0, %v3891_v1 }
 0x4d0   :  { %v121_v51 = vpack.c.bf16 %v3057_v50, %v3056_v49 }
 0x4d1   :  { %v82_v53 = vpop.permute.xlu1 %81 }
 0x4d2   :  { %vm96_vm10 = vcmp.eq.s32.totalorder %v82_v53, %v3951_v16  ;;  %3444 = vmatmul.mubr.msk.bf16.gmra.mxu0 %vm172_vm3, %v121_v51 }
 0x4d3   :  { %v3751_v55 = vpop.eup %3750  ;;  %3447 = vmatprep.mubr.msk.bf16.mxu0 %vm3892_vm0, %v3891_v1  ;;  %v3059_v57 = vsel %vm96_vm10, 1.0, %v3891_v1 }
 0x4d4   :  { %v641_v56 = vmul.f32 %v3751_v55, %v3743_v22  ;;  %v122_v62 = vpack.c.bf16 %v3059_v57, %v3058_v60  ;;  %v3160_v55 = vunpack.c.h.bf16 %v3253_v54  ;;  %v3252_v57 = vld [vmem:[#allocation2 + $0x20] sm:$0xff]  }
 0x4d5   :  { %v88_v61 = vpop.permute.xlu1 %87 }
 0x4d6   :  { %3494 = vmatprep.mubr.msk.f32.mxu1 %vm598_vm7, %v641_v56  ;;  %vm98_vm12 = vcmp.eq.s32.totalorder %v88_v61, %v3951_v16  ;;  %v3159_v56 = vunpack.c.l.bf16 %v3253_v54 }
 0x4d7   :  { %3495 = vmatmul.mubr.msk.f32.vlgmr.msra.gmra.mxu1 %vm598_vm7, %v642_v58  ;;  %v3061_v0 = vsel %vm98_vm12, 1.0, %v3891_v1  ;;  %v3156_v58 = vunpack.c.h.bf16 %v3252_v57 }
 0x4d8   :  { %3498 = vmatpush3.msra.mxu1 %v3152_v45  ;;  %v123_v3 = vpack.c.bf16 %v3061_v0, %v3060_v2 }
 0x4d9   :  { %3499 = vmatprep.subr.mxu1 %v3151_v59 }
 0x4da   :  { %3448 = vmatmul.mubr.msk.bf16.gmra.mxu0 %vm172_vm3, %v122_v62  ;;  %3500 = vmatpush3.msra.mxu1 %v3151_v59  ;;  %v3155_v59 = vunpack.c.l.bf16 %v3252_v57 }
 0x4db   :  { %3451 = vmatprep.mubr.msk.bf16.mxu0 %vm3892_vm0, %v3891_v1  ;;  %3501 = vmatprep.subr.mxu1 %v3148_v5 }
 0x4dc   :  { %3502 = vmatpush3.msra.mxu1 %v3148_v5 }
 0x4dd   :  { %3503 = vmatprep.subr.mxu1 %v3147_v6 }
 0x4de   :  { %3504 = vmatpush3.msra.mxu1 %v3147_v6 }
 0x4df   :  { %3511 = vmatprep.subr.mxu1 %v3160_v55 }
 0x4e2   :  { %3452 = vmatmul.mubr.msk.bf16.gmra.mxu0 %vm172_vm3, %v123_v3 }
 0x563   :  { %v3489_v7 = vpop.f32.mrf.mxu1 }
 0x565   :  { %v721_v8 = vpop.f32.mrf.mxu1 }
 0x566   :  { %3505 = vmatprep.mubr.msk.f32.mxu1 %vm322_vm6, %v721_v8 }
 0x567   :  { %3506 = vmatmul.mubr.msk.f32.vlgmr.msra.gmra.mxu1 %vm322_vm6, %v3489_v7  ;;  %v4127_v7 = vld [vmem:[#allocation2 + $0x78] sm:$0xff]  }
 0x568   :  { %3512 = vmatpush3.msra.mxu1 %v3160_v55  ;;  %v3200_v8 = vunpack.c.h.bf16 %v4127_v7 }
 0x569   :  { %3513 = vmatprep.subr.mxu1 %v3159_v56 }
 0x56a   :  { %3514 = vmatpush3.msra.mxu1 %v3159_v56  ;;  %v3262_v56 = vld [vmem:[#allocation2 + $0x70] sm:$0xff]  }
 0x56b   :  { %3515 = vmatprep.subr.mxu1 %v3156_v58 }
 0x56c   :  { %3516 = vmatpush3.msra.mxu1 %v3156_v58  ;;  %v3199_v58 = vunpack.c.l.bf16 %v4127_v7 }
 0x56d   :  { %3517 = vmatprep.subr.mxu1 %v3155_v59 }
 0x56e   :  { %3518 = vmatpush3.msra.mxu1 %v3155_v59 }
 0x56f   :  { %3563 = vmatprep.subr.mxu1 %v3200_v8 }
 0x592   :  { %v4080_v16 = vpop.f32.mrf.mxu0 }
 0x594   :  { %v3445_v9 = vpop.f32.mrf.mxu0 }
 0x595   :  { %v3261_v9 = vld [vmem:[#allocation2 + $0x68] sm:$0xff]  }
 0x596   :  { %v4082_v10 = vpop.f32.mrf.mxu0 }
 0x597   :  { %v3496_v11 = vpop.f32.mrf.mxu1 }
 0x598   :  { %v3446_v12 = vpop.f32.mrf.mxu0 }
 0x599   :  { %v808_v13 = vpop.f32.mrf.mxu1  ;;  %v3192_v12 = vunpack.c.h.bf16 %v3261_v9 }
 0x59a   :  { %v4084_v14 = vpop.f32.mrf.mxu0  ;;  %3508 = vmatprep.mubr.msk.f32.mxu1 %vm322_vm6, %v808_v13  ;;  %v3191_v13 = vunpack.c.l.bf16 %v3261_v9 }
 0x59b   :  { %3509 = vmatmul.mubr.msk.f32.gmra.mxu1 %vm322_vm6, %v3496_v11  ;;  %v3260_v11 = vld [vmem:[#allocation2 + $0x60] sm:$0xff]   ;;  %3525 = vmatprep.subr.mxu0 %v3192_v12 }
 0x59c   :  { %v3449_v15 = vpop.f32.mrf.mxu0  ;;  %3526 = vmatpush3.msra.mxu0 %v3192_v12 }
 0x59d   :  { %v3188_v15 = vunpack.c.h.bf16 %v3260_v11  ;;  %3527 = vmatprep.subr.mxu0 %v3191_v13 }
 0x59e   :  { %v4088_v17 = vpop.f32.mrf.mxu0  ;;  %3528 = vmatpush3.msra.mxu0 %v3191_v13 }
 0x59f   :  { %3529 = vmatprep.subr.mxu0 %v3188_v15 }
 0x5a0   :  { %v3450_v18 = vpop.f32.mrf.mxu0  ;;  %3530 = vmatpush3.msra.mxu0 %v3188_v15  ;;  %v3254_v15 = vld [vmem:[#allocation2 + $0x30] sm:$0xff]  }
 0x5a1   :  { %v3259_v18 = vld [vmem:[#allocation2 + $0x58] sm:$0xff]  }
 0x5a2   :  { %v4090_v19 = vpop.f32.mrf.mxu0 }
 0x5a4   :  { %v3453_v20 = vpop.f32.mrf.mxu0 }
 0x5a5   :  { %v3187_v20 = vunpack.c.l.bf16 %v3260_v11 }
 0x5a6   :  { %v4092_v21 = vpop.f32.mrf.mxu0 }
 0x5a7   :  { %3531 = vmatprep.subr.mxu0 %v3187_v20 }
 0x5a8   :  { %v3454_v22 = vpop.f32.mrf.mxu0  ;;  %3532 = vmatpush3.msra.mxu0 %v3187_v20  ;;  %v3163_v20 = vunpack.c.l.bf16 %v3254_v15 }
 0x5a9   :  { %v3184_v22 = vunpack.c.h.bf16 %v3259_v18 }
 0x5ab   :  { %3533 = vmatprep.subr.mxu0 %v3184_v22 }
 0x5ac   :  { %3534 = vmatpush3.msra.mxu0 %v3184_v22  ;;  %v993_v22 = vsub.s32 4, %v3983_v38 }
 0x627   :  { %v3507_v25 = vpop.f32.mrf.mxu1 }
 0x628   :  { %v905_v26 = vadd.f32 %v3507_v25, %v820_v24  ;;  %v3183_v25 = vunpack.c.l.bf16 %v3259_v18  ;;  %v3164_v18 = vunpack.c.h.bf16 %v3254_v15 }
 0x629   :  { %v899_v27 = vpop.f32.mrf.mxu1 }
 0x62a   :  { %v900_v28 = vadd.f32 %v899_v27, %v820_v24  ;;  %v919_v29 = vadd.f32 %v905_v26, %v3971_v32  ;;  %v3257_v27 = vld [vmem:[#allocation2 + $0x48] sm:$0xff]   ;;  %3535 = vmatprep.subr.mxu0 %v3183_v25 }
 0x62b   :  { %3536 = vmatpush3.msra.mxu0 %v3183_v25 }
 0x62c   :  { %v925_v31 = vsel %vm322_vm6, %v919_v29, 0.0  ;;  %v918_v33 = vadd.f32 %v900_v28, %v3967_v30 }
 0x62d   :  { %926 = vadd.xlane.f32.xlu1 %v925_v31  ;;  %v3256_v31 = vld [vmem:[#allocation2 + $0x40] sm:$0xff]  }
 0x62e   :  { %v922_v35 = vsel %vm322_vm6, %v918_v33, 0.0 }
 0x62f   :  { %923 = vadd.xlane.f32.xlu0 %v922_v35  ;;  %v3172_v35 = vunpack.c.h.bf16 %v3256_v31 }
 0x65b   :  { %v3510_v37 = vpop.f32.mrf.mxu1 }
 0x65c   :  { %v915_v42 = vadd.f32 %v3510_v37, %v820_v24  ;;  %v3171_v37 = vunpack.c.l.bf16 %v3256_v31 }
 0x65d   :  { %v909_v41 = vpop.f32.mrf.mxu1 }
 0x65e   :  { %v910_v43 = vadd.f32 %v909_v41, %v820_v24  ;;  %v921_v46 = vadd.f32 %v915_v42, %v3979_v36  ;;  %v3258_v24 = vld [vmem:[#allocation2 + $0x50] sm:$0xff]  }
 0x65f   :  { %v3180_v26 = vunpack.c.h.bf16 %v3258_v24  ;;  %v3179_v28 = vunpack.c.l.bf16 %v3258_v24  ;;  %v994_v24 = vrot.slane %v3991_v40, %v993_v22 }
 0x660   :  { %v920_v44 = vadd.f32 %v910_v43, %v3975_v34  ;;  %v931_v32 = vsel %vm322_vm6, %v921_v46, 0.0 }
 0x661   :  { %3537 = vmatprep.subr.mxu0 %v3180_v26 }
 0x662   :  { %v928_v45 = vsel %vm322_vm6, %v920_v44, 0.0  ;;  %3538 = vmatpush3.msra.mxu0 %v3180_v26 }
 0x663   :  { %929 = vadd.xlane.f32.xlu0 %v928_v45  ;;  %3539 = vmatprep.subr.mxu0 %v3179_v28 }
 0x664   :  { %3540 = vmatpush3.msra.mxu0 %v3179_v28 }
 0x667   :  { %932 = vadd.xlane.f32.xlu0 %v931_v32  ;;  %v977_v32 = vsub.s32 2, %v3983_v38 }
 0x6b6   :  { %v927_v47 = vpop.xlane.xlu1 %926 }
 0x6b7   :  { %v936_v30 = vmul.f32 0.03125, %v927_v47 }
 0x6b8   :  { %v924_v48 = vpop.xlane.xlu0 %923 }
 0x6b9   :  { %v4107_v49 = vsub.f32 %v919_v29, %v936_v30  ;;  %v935_v50 = vmul.f32 0.03125, %v924_v48  ;;  %v3176_v29 = vunpack.c.h.bf16 %v3257_v27  ;;  %v978_v30 = vrot.slane %v3991_v40, %v977_v32 }
 0x6ba   :  { %v985_v48 = vsub.s32 3, %v3983_v38 }
 0x6bb   :  { %v4109_v51 = vsub.f32 %v918_v33, %v935_v50  ;;  %v944_v52 = vmul.f32 %v4107_v49, %v4107_v49  ;;  %v3175_v33 = vunpack.c.l.bf16 %v3257_v27  ;;  %3541 = vmatprep.subr.mxu0 %v3176_v29 }
 0x6bc   :  { %3542 = vmatpush3.msra.mxu0 %v3176_v29 }
 0x6bd   :  { %v950_v34 = vsel %vm322_vm6, %v944_v52, 0.0  ;;  %v943_v36 = vmul.f32 %v4109_v51, %v4109_v51  ;;  %3543 = vmatprep.subr.mxu0 %v3175_v33 }
 0x6be   :  { %951 = vadd.xlane.f32.xlu0 %v950_v34  ;;  %3544 = vmatpush3.msra.mxu0 %v3175_v33  ;;  %v4186_v33 = vld [vmem:[%s4527_s2 + $0x8] sm:$0xff] }
 0x6bf   :  { %v947_v53 = vsel %vm322_vm6, %v943_v36, 0.0  ;;  %3545 = vmatprep.subr.mxu0 %v3172_v35 }
 0x6c0   :  { %948 = vadd.xlane.f32.xlu1 %v947_v53  ;;  %3546 = vmatpush3.msra.mxu0 %v3172_v35  ;;  %v986_v53 = vrot.slane %v3991_v40, %v985_v48 }
 0x6c1   :  { %3547 = vmatprep.subr.mxu0 %v3171_v37 }
 0x6c2   :  { %3548 = vmatpush3.msra.mxu0 %v3171_v37  ;;  %v1317_v37 = vrot.slane %v4186_v33, %v3986_v39 }
 0x6ec   :  { %v930_v60 = vpop.xlane.xlu0 %929 }
 0x6ed   :  { %v937_v61 = vmul.f32 0.03125, %v930_v60 }
 0x6ef   :  { %v4117_v62 = vsub.f32 %v920_v44, %v937_v61 }
 0x6f0   :  { %v933_v63 = vpop.xlane.xlu0 %932 }
 0x6f1   :  { %v938_v0 = vmul.f32 0.03125, %v933_v63  ;;  %v945_v2 = vmul.f32 %v4117_v62, %v4117_v62 }
 0x6f3   :  { %v4121_v3 = vsub.f32 %v921_v46, %v938_v0  ;;  %v953_v4 = vsel %vm322_vm6, %v945_v2, 0.0 }
 0x6f4   :  { %954 = vadd.xlane.f32.xlu1 %v953_v4 }
 0x6f5   :  { %v946_v5 = vmul.f32 %v4121_v3, %v4121_v3 }
 0x6f7   :  { %v956_v6 = vsel %vm322_vm6, %v946_v5, 0.0 }
 0x6f8   :  { %957 = vadd.xlane.f32.xlu0 %v956_v6 }
 0x747   :  { %v952_v41 = vpop.xlane.xlu0 %951 }
 0x748   :  { %v960_v42 = vmul.f32 0.03125, %v952_v41 }
 0x749   :  { %v949_v43 = vpop.xlane.xlu1 %948 }
 0x74a   :  { %v964_v44 = vadd.f32 1e-05, %v960_v42  ;;  %v959_v45 = vmul.f32 0.03125, %v949_v43 }
 0x74c   :  { %3752 = vrsqrt.f32 %v964_v44  ;;  %v963_v46 = vadd.f32 1e-05, %v959_v45 }
 0x74e   :  { %3754 = vrsqrt.f32 %v963_v46 }
 0x759   :  { %v3753_v47 = vpop.eup %3752 }
 0x75a   :  { %v972_v50 = vmul.f32 %v3753_v47, %v4107_v49  ;;  %v3196_v49 = vunpack.c.h.bf16 %v3262_v56 }
 0x75b   :  { %v3755_v52 = vpop.eup %3754 }
 0x75c   :  { %v971_v34 = vmul.f32 %v3755_v52, %v4109_v51  ;;  %v980_v36 = vmul.f32 %v978_v30, %v972_v50  ;;  %v3195_v51 = vunpack.c.l.bf16 %v3262_v56 }
 0x75e   :  { %v979_v54 = vmul.f32 %v978_v30, %v971_v34  ;;  %v4144_v57 = vadd.f32 %v986_v53, %v980_v36 }
 0x760   :  { %v4142_v55 = vadd.f32 %v986_v53, %v979_v54 }
 0x762   :  { %3519 = vmatprep.mubr.msk.f32.mxu1 %vm322_vm6, %v4142_v55 }
 0x763   :  { %3520 = vmatmul.mubr.msk.f32.vlgmr.msra.gmra.mxu1 %vm322_vm6, %v4144_v57 }
 0x764   :  { %3564 = vmatpush3.msra.mxu1 %v3200_v8 }
 0x765   :  { %3565 = vmatprep.subr.mxu1 %v3199_v58 }
 0x766   :  { %3566 = vmatpush3.msra.mxu1 %v3199_v58 }
 0x767   :  { %3567 = vmatprep.subr.mxu1 %v3196_v49 }
 0x768   :  { %3568 = vmatpush3.msra.mxu1 %v3196_v49 }
 0x769   :  { %3569 = vmatprep.subr.mxu1 %v3195_v51 }
 0x76a   :  { %3570 = vmatpush3.msra.mxu1 %v3195_v51 }
 0x76b   :  { %3580 = vmatprep.subr.mxu1 %v3891_v1 }
 0x77d   :  { %v955_v59 = vpop.xlane.xlu1 %954 }
 0x77e   :  { %v961_v60 = vmul.f32 0.03125, %v955_v59 }
 0x780   :  { %v965_v61 = vadd.f32 1e-05, %v961_v60 }
 0x781   :  { %v958_v63 = vpop.xlane.xlu0 %957 }
 0x782   :  { %3756 = vrsqrt.f32 %v965_v61  ;;  %v962_v0 = vmul.f32 0.03125, %v958_v63 }
 0x784   :  { %v966_v2 = vadd.f32 1e-05, %v962_v0 }
 0x786   :  { %3758 = vrsqrt.f32 %v966_v2 }
 0x78f   :  { %v3757_v4 = vpop.eup %3756 }
 0x790   :  { %v973_v5 = vmul.f32 %v3757_v4, %v4117_v62  ;;  %v3255_v62 = vld [vmem:[#allocation2 + $0x38] sm:$0xff]  }
 0x791   :  { %v3167_v13 = vunpack.c.l.bf16 %v3255_v62 }
 0x792   :  { %v981_v6 = vmul.f32 %v978_v30, %v973_v5 }
 0x793   :  { %v3759_v7 = vpop.eup %3758 }
 0x794   :  { %v4155_v8 = vadd.f32 %v986_v53, %v981_v6  ;;  %v974_v9 = vmul.f32 %v3759_v7, %v4121_v3  ;;  %v3168_v3 = vunpack.c.h.bf16 %v3255_v62 }
 0x796   :  { %3522 = vmatprep.mubr.msk.f32.mxu1 %vm322_vm6, %v4155_v8  ;;  %v982_v11 = vmul.f32 %v978_v30, %v974_v9  ;;  %3549 = vmatprep.subr.mxu0 %v3168_v3 }
 0x797   :  { %3550 = vmatpush3.msra.mxu0 %v3168_v3 }
 0x798   :  { %v4160_v12 = vadd.f32 %v986_v53, %v982_v11  ;;  %3551 = vmatprep.subr.mxu0 %v3167_v13 }
 0x799   :  { %3552 = vmatpush3.msra.mxu0 %v3167_v13 }
 0x79a   :  { %3523 = vmatmul.mubr.msk.f32.gmra.mxu1 %vm322_vm6, %v4160_v12  ;;  %3553 = vmatprep.subr.mxu0 %v3164_v18 }
 0x79b   :  { %3571 = vmatprep.mubr.msk.f32.mxu1 %vm322_vm6, %v4080_v16  ;;  %3554 = vmatpush3.msra.mxu0 %v3164_v18 }
 0x79c   :  { %3555 = vmatprep.subr.mxu0 %v3163_v20 }
 0x79d   :  { %3556 = vmatpush3.msra.mxu0 %v3163_v20 }
 0x79e   :  { %3572 = vmatmul.mubr.msk.f32.vlgmr.msra.gmra.mxu1 %vm322_vm6, %v4082_v10  ;;  %3595 = vmatprep.subr.mxu0 %v3891_v1 }
 0x79f   :  { %3574 = vmatprep.mubr.msk.f32.mxu1 %vm322_vm6, %v4084_v14 }
 0x7a2   :  { %3575 = vmatmul.mubr.msk.f32.gmra.mxu1 %vm322_vm6, %v4088_v17 }
 0x7a3   :  { %3577 = vmatprep.mubr.msk.f32.mxu1 %vm322_vm6, %v4090_v19 }
 0x7a6   :  { %3578 = vmatmul.mubr.msk.f32.gmra.mxu1 %vm322_vm6, %v4092_v21 }
 0x7a7   :  { %3586 = vmatprep.mubr.msk.f32.mxu1 %vm3892_vm0, %v3891_v1 }
 0x823   :  { %v3521_v25 = vpop.f32.mrf.mxu1 }
 0x824   :  { %v1079_v26 = vadd.f32 %v3521_v25, %v994_v24 }
 0x825   :  { %v1073_v27 = vpop.f32.mrf.mxu1 }
 0x826   :  { %v1074_v28 = vadd.f32 %v1073_v27, %v994_v24  ;;  %v1093_v31 = vmax.f32 %v1079_v26, 0.0 }
 0x828   :  { %v1092_v29 = vmax.f32 %v1074_v28, 0.0 }
 0x82a   :  { %3557 = vmatprep.mubr.f32.mxu0 %v1092_v29 }
 0x82b   :  { %3558 = vmatmul.mubr.f32.vlgmr.msra.gmra.mxu0 %v1093_v31 }
 0x85a   :  { %v3524_v35 = vpop.f32.mrf.mxu1 }
 0x85b   :  { %v1089_v41 = vadd.f32 %v3524_v35, %v994_v24 }
 0x85c   :  { %v1083_v42 = vpop.f32.mrf.mxu1 }
 0x85d   :  { %v1084_v40 = vadd.f32 %v1083_v42, %v994_v24  ;;  %v1095_v46 = vmax.f32 %v1089_v41, 0.0 }
 0x85e   :  { %v3573_v43 = vpop.f32.mrf.mxu1 }
 0x85f   :  { %v1094_v44 = vmax.f32 %v1084_v40, 0.0  ;;  %v4190_v45 = vadd.f32 %v3573_v43, %v1317_v37 }
 0x860   :  { %v1402_v47 = vpop.f32.mrf.mxu1 }
 0x861   :  { %3560 = vmatprep.mubr.f32.mxu0 %v1094_v44  ;;  %1436 = vrot.lane.b32.xlu0 %v4190_v45, %s3893_s11  ;;  %v4208_v56 = vadd.f32 %v1402_v47, %v1317_v37 }
 0x862   :  { %3561 = vmatmul.mubr.f32.gmra.mxu0 %v1095_v46  ;;  %v3576_v30 = vpop.f32.mrf.mxu1 }
 0x863   :  { %3601 = vmatprep.mubr.msk.f32.mxu0 %vm3892_vm0, %v3891_v1  ;;  %v4212_v58 = vadd.f32 %v3576_v30, %v1317_v37 }
 0x864   :  { %v1412_v50 = vpop.f32.mrf.mxu1 }
 0x865   :  { %v4196_v52 = vadd.f32 %v1412_v50, %v1317_v37 }
 0x866   :  { %v3579_v34 = vpop.f32.mrf.mxu1 }
 0x867   :  { %1438 = vrot.lane.b32.xlu1 %v4196_v52, %s3893_s11  ;;  %v4200_v53 = vadd.f32 %v3579_v34, %v1317_v37 }
 0x868   :  { %v1422_v36 = vpop.f32.mrf.mxu1 }
 0x869   :  { %v4202_v54 = vadd.f32 %v1422_v36, %v1317_v37 }
 0x86b   :  { %1539 = vrot.lane.b32.xlu1 %v4200_v53, %s3893_s11  ;;  %1537 = vrot.lane.b32.xlu0 %v4202_v54, %s3893_s11 }
 0x86f   :  { %1434 = vrot.lane.b32.xlu1 %v4208_v56, %s3893_s11 }
 0x873   :  { %1535 = vrot.lane.b32.xlu1 %v4212_v58, %s3893_s11 }
 0x8d3   :  { %v1437_v51 = vpop.permute.xlu0 %1436 }
 0x8d9   :  { %v1439_v49 = vpop.permute.xlu1 %1438 }
 0x8da   :  { %3581 = vmatpush3.xpose.msk.msra.mxu1 %vm322_vm6, %v1439_v49 }
 0x8db   :  { %3582 = vmatprep.subr.mxu1 %v3891_v1 }
 0x8dd   :  { %v1540_v59 = vpop.permute.xlu1 %1539  ;;  %v1538_v60 = vpop.permute.xlu0 %1537 }
 0x8de   :  { %3583 = vmatpush3.xpose.msk.msra.mxu1 %vm322_vm6, %v1437_v51  ;;  %3596 = vmatpush3.xpose.msk.msra.mxu0 %vm322_vm6, %v1540_v59 }
 0x8df   :  { %3584 = vmatprep.subr.mxu1 %v3891_v1  ;;  %3597 = vmatprep.subr.mxu0 %v3891_v1 }
 0x8e1   :  { %v1435_v61 = vpop.permute.xlu1 %1434 }
 0x8e2   :  { %3585 = vmatpush3.xpose.msk.msra.mxu1 %vm322_vm6, %v1435_v61  ;;  %3598 = vmatpush3.xpose.msk.msra.mxu0 %vm322_vm6, %v1538_v60 }
 0x8e3   :  { %3599 = vmatprep.subr.mxu0 %v3891_v1  ;;  %3610 = vmatprep.subr.mxu1 %v3891_v1 }
 0x8e5   :  { %3587 = vmatmul.mubr.msk.f32.vlgmr.msra.gmra.mxu1 %vm322_vm6, %v4208_v56  ;;  %v1536_v63 = vpop.permute.xlu1 %1535 }
 0x8e6   :  { %3600 = vmatpush3.xpose.msk.msra.mxu0 %vm322_vm6, %v1536_v63  ;;  %3589 = vmatprep.mubr.msk.f32.mxu1 %vm3892_vm0, %v3891_v1 }
 0x8e7   :  { %3625 = vmatprep.subr.mxu0 %v3891_v1 }
 0x8e9   :  { %3590 = vmatmul.mubr.msk.f32.gmra.mxu1 %vm322_vm6, %v4190_v45  ;;  %3602 = vmatmul.mubr.msk.f32.vlgmr.msra.gmra.mxu0 %vm322_vm6, %v4212_v58 }
 0x8ea   :  { %3592 = vmatprep.mubr.msk.f32.mxu1 %vm3892_vm0, %v3891_v1  ;;  %3604 = vmatprep.mubr.msk.f32.mxu0 %vm3892_vm0, %v3891_v1 }
 0x8eb   :  { %v4252_v0 = vpop.f32.mrf.mxu0 }
 0x8ed   :  { %3593 = vmatmul.mubr.msk.f32.gmra.mxu1 %vm322_vm6, %v4196_v52  ;;  %3605 = vmatmul.mubr.msk.f32.gmra.mxu0 %vm322_vm6, %v4202_v54  ;;  %v4254_v2 = vpop.f32.mrf.mxu0 }
 0x8ee   :  { %3607 = vmatprep.mubr.msk.f32.mxu0 %vm3892_vm0, %v3891_v1  ;;  %3616 = vmatprep.mubr.msk.f32.mxu1 %vm3892_vm0, %v3891_v1 }
 0x8f1   :  { %3608 = vmatmul.mubr.msk.f32.gmra.mxu0 %vm322_vm6, %v4200_v53 }
 0x8f2   :  { %3631 = vmatprep.mubr.msk.f32.mxu0 %vm3892_vm0, %v3891_v1 }
 0x922   :  { %v4256_v4 = vpop.f32.mrf.mxu0 }
 0x924   :  { %v4259_v7 = vpop.f32.mrf.mxu0 }
 0x9a5   :  { %v1518_v5 = vpop.f32.mrf.mxu1 }
 0x9a6   :  { %v1634_v6 = vsel %vm1633_vm14, %v1518_v5, -inf }
 0x9a7   :  { %v3588_v9 = vpop.f32.mrf.mxu1  ;;  %1635 = vmax.xlane.f32.xlu0 %v1634_v6 }
 0x9a9   :  { %v1523_v11 = vpop.f32.mrf.mxu1  ;;  %v1619_v62 = vpop.f32.mrf.mxu0 }
 0x9aa   :  { %v1637_v3 = vsel %vm1633_vm14, %v1523_v11, -inf  ;;  %v1643_v13 = vsel %vm1633_vm14, %v1619_v62, -inf }
 0x9ab   :  { %1638 = vmax.xlane.f32.xlu1 %v1637_v3  ;;  %v3591_v15 = vpop.f32.mrf.mxu1  ;;  %1644 = vmax.xlane.f32.xlu0 %v1643_v13  ;;  %v3603_v18 = vpop.f32.mrf.mxu0 }
 0x9ad   :  { %v1528_v20 = vpop.f32.mrf.mxu1  ;;  %v1624_v24 = vpop.f32.mrf.mxu0 }
 0x9ae   :  { %v1640_v25 = vsel %vm1633_vm14, %v1528_v20, -inf  ;;  %v1646_v26 = vsel %vm1633_vm14, %v1624_v24, -inf }
 0x9af   :  { %v3594_v27 = vpop.f32.mrf.mxu1  ;;  %1641 = vmax.xlane.f32.xlu0 %v1640_v25  ;;  %1647 = vmax.xlane.f32.xlu1 %v1646_v26  ;;  %v3606_v28 = vpop.f32.mrf.mxu0  ;;  %v3265_v26 = vld [vmem:[#allocation2 + $0x88] sm:$0xff]  }
 0x9b0   :  { %v3208_v27 = vunpack.c.h.bf16 %v3265_v26 }
 0x9b1   :  { %v1629_v29 = vpop.f32.mrf.mxu0 }
 0x9b2   :  { %v1649_v31 = vsel %vm1633_vm14, %v1629_v29, -inf }
 0x9b3   :  { %1650 = vmax.xlane.f32.xlu0 %v1649_v31  ;;  %v3609_v35 = vpop.f32.mrf.mxu0 }
 0x9c0   :  { %1704 = vrot.lane.b32.xlu1 %v4196_v52, %s3885_s18 }
 0x9c4   :  { %1700 = vrot.lane.b32.xlu1 %v4208_v56, %s3885_s18 }
 0x9c8   :  { %1802 = vrot.lane.b32.xlu1 %v4200_v53, %s3885_s18 }
 0x9c9   :  { %1702 = vrot.lane.b32.xlu0 %v4190_v45, %s3885_s18 }
 0xa30   :  { %v1636_v37 = vpop.xlane.xlu0 %1635 }
 0xa31   :  { %v1652_v41 = vsub.f32 %v1518_v5, %v1636_v37 }
 0xa33   :  { %v1658_v42 = vmul.f32 1.442695, %v1652_v41 }
 0xa34   :  { %v1639_v40 = vpop.xlane.xlu1 %1638  ;;  %v1645_v43 = vpop.xlane.xlu0 %1644 }
 0xa35   :  { %3760 = vpow2.f32 %v1658_v42  ;;  %v1653_v44 = vsub.f32 %v1523_v11, %v1639_v40  ;;  %v1655_v46 = vsub.f32 %v1619_v62, %v1645_v43  ;;  %v3207_v43 = vunpack.c.l.bf16 %v3265_v26 }
 0xa37   :  { %v1660_v47 = vmul.f32 1.442695, %v1653_v44  ;;  %v1664_v30 = vmul.f32 1.442695, %v1655_v46 }
 0xa38   :  { %v1642_v50 = vpop.xlane.xlu0 %1641  ;;  %v1648_v52 = vpop.xlane.xlu1 %1647 }
 0xa39   :  { %3762 = vpow2.f32 %v1660_v47  ;;  %v1654_v34 = vsub.f32 %v1528_v20, %v1642_v50  ;;  %v1656_v36 = vsub.f32 %v1624_v24, %v1648_v52 }
 0xa3a   :  { %3764 = vpow2.f32 %v1664_v30 }
 0xa3b   :  { %v1662_v53 = vmul.f32 1.442695, %v1654_v34  ;;  %v1666_v56 = vmul.f32 1.442695, %v1656_v36 }
 0xa3c   :  { %v1705_v49 = vpop.permute.xlu1 %1704  ;;  %v1651_v45 = vpop.xlane.xlu0 %1650 }
 0xa3d   :  { %3766 = vpow2.f32 %v1662_v53  ;;  %v1657_v51 = vsub.f32 %v1629_v29, %v1651_v45  ;;  %3611 = vmatpush3.msra.mxu1 %v1705_v49  ;;  %v3264_v49 = vld [vmem:[#allocation2 + $0x80] sm:$0xff]  }
 0xa3e   :  { %3768 = vpow2.f32 %v1666_v56  ;;  %3612 = vmatprep.subr.mxu1 %v3891_v1  ;;  %v3204_v45 = vunpack.c.h.bf16 %v3264_v49 }
 0xa3f   :  { %v1668_v59 = vmul.f32 1.442695, %v1657_v51  ;;  %v3203_v51 = vunpack.c.l.bf16 %v3264_v49 }
 0xa40   :  { %v1701_v60 = vpop.permute.xlu1 %1700  ;;  %v1703_v61 = vpop.permute.xlu0 %1702 }
 0xa41   :  { %3770 = vpow2.f32 %v1668_v59  ;;  %3613 = vmatpush3.msra.mxu1 %v1703_v61 }
 0xa42   :  { %v3761_v63 = vpop.eup %3760  ;;  %3614 = vmatprep.subr.mxu1 %v3891_v1 }
 0xa43   :  { %3615 = vmatpush3.msra.mxu1 %v1701_v60  ;;  %v1670_v5 = vsel %vm1633_vm14, %v3761_v63, 0.0 }
 0xa44   :  { %1671 = vadd.xlane.f32.xlu1 %v1670_v5  ;;  %v1803_v6 = vpop.permute.xlu1 %1802  ;;  %3640 = vmatprep.subr.mxu1 %v3208_v27 }
 0xa45   :  { %3626 = vmatpush3.msra.mxu0 %v1803_v6 }
 0xa46   :  { %v3763_v9 = vpop.eup %3762  ;;  %3627 = vmatprep.subr.mxu0 %v3891_v1 }
 0xa47   :  { %v3765_v11 = vpop.eup %3764  ;;  %v1673_v62 = vsel %vm1633_vm14, %v3763_v9, 0.0 }
 0xa48   :  { %v1679_v3 = vsel %vm1633_vm14, %v3765_v11, 0.0  ;;  %1674 = vadd.xlane.f32.xlu0 %v1673_v62 }
 0xa49   :  { %1680 = vadd.xlane.f32.xlu1 %v1679_v3 }
 0xa4a   :  { %v3767_v13 = vpop.eup %3766 }
 0xa4b   :  { %v3769_v15 = vpop.eup %3768  ;;  %v1676_v18 = vsel %vm1633_vm14, %v3767_v13, 0.0 }
 0xa4c   :  { %v1682_v20 = vsel %vm1633_vm14, %v3769_v15, 0.0  ;;  %1677 = vadd.xlane.f32.xlu0 %v1676_v18  ;;  %v1899_v18 = vrot.slane %v4186_v33, %v4095_v23 }
 0xa4d   :  { %1683 = vadd.xlane.f32.xlu1 %v1682_v20 }
 0xa4e   :  { %v3771_v24 = vpop.eup %3770 }
 0xa4f   :  { %v1685_v25 = vsel %vm1633_vm14, %v3771_v24, 0.0 }
 0xa50   :  { %1686 = vadd.xlane.f32.xlu0 %v1685_v25 }
 0xa5e   :  { %1798 = vrot.lane.b32.xlu1 %v4212_v58, %s3885_s18 }
 0xa66   :  { %1800 = vrot.lane.b32.xlu0 %v4202_v54, %s3885_s18 }
 0xacd   :  { %v1672_v28 = vpop.xlane.xlu1 %1671 }
 0xace   :  { %3772 = vrcp.f32 %v1672_v28 }
 0xad1   :  { %v1675_v29 = vpop.xlane.xlu0 %1674 }
 0xad2   :  { %v1681_v31 = vpop.xlane.xlu1 %1680  ;;  %3774 = vrcp.f32 %v1675_v29 }
 0xad3   :  { %3776 = vrcp.f32 %v1681_v31 }
 0xad5   :  { %v1678_v35 = vpop.xlane.xlu0 %1677 }
 0xad6   :  { %v1684_v37 = vpop.xlane.xlu1 %1683  ;;  %3778 = vrcp.f32 %v1678_v35 }
 0xad7   :  { %3780 = vrcp.f32 %v1684_v37 }
 0xad9   :  { %v1687_v41 = vpop.xlane.xlu0 %1686 }
 0xada   :  { %3782 = vrcp.f32 %v1687_v41  ;;  %v1799_v44 = vpop.permute.xlu1 %1798 }
 0xadb   :  { %v3773_v42 = vpop.eup %3772 }
 0xadc   :  { %v1694_v58 = vmul.f32 %v3773_v42, %v3761_v63 }
 0xadd   :  { %v1801_v40 = vpop.permute.xlu0 %1800 }
 0xade   :  { %3617 = vmatmul.mubr.msk.f32.vlgmr.msra.gmra.mxu1 %vm1633_vm14, %v1694_v58  ;;  %3628 = vmatpush3.msra.mxu0 %v1801_v40 }
 0xadf   :  { %v3775_v54 = vpop.eup %3774  ;;  %3629 = vmatprep.subr.mxu0 %v3891_v1  ;;  %3619 = vmatprep.mubr.msk.f32.mxu1 %vm3892_vm0, %v3891_v1 }
 0xae0   :  { %v3777_v46 = vpop.eup %3776  ;;  %3630 = vmatpush3.msra.mxu0 %v1799_v44  ;;  %v1695_v47 = vmul.f32 %v3775_v54, %v3763_v9  ;;  %3641 = vmatpush3.msra.mxu1 %v3208_v27 }
 0xae1   :  { %v1697_v30 = vmul.f32 %v3777_v46, %v3765_v11  ;;  %3642 = vmatprep.subr.mxu1 %v3207_v43 }
 0xae2   :  { %3620 = vmatmul.mubr.msk.f32.gmra.mxu1 %vm1633_vm14, %v1695_v47 }
 0xae3   :  { %v3779_v50 = vpop.eup %3778  ;;  %3632 = vmatmul.mubr.msk.f32.vlgmr.msra.gmra.mxu0 %vm1633_vm14, %v1697_v30  ;;  %3622 = vmatprep.mubr.msk.f32.mxu1 %vm3892_vm0, %v3891_v1 }
 0xae4   :  { %v3781_v52 = vpop.eup %3780  ;;  %3634 = vmatprep.mubr.msk.f32.mxu0 %vm3892_vm0, %v3891_v1  ;;  %v1696_v34 = vmul.f32 %v3779_v50, %v3767_v13  ;;  %3643 = vmatpush3.msra.mxu1 %v3207_v43 }
 0xae5   :  { %v1698_v36 = vmul.f32 %v3781_v52, %v3769_v15  ;;  %3644 = vmatprep.subr.mxu1 %v3204_v45 }
 0xae6   :  { %3623 = vmatmul.mubr.msk.f32.gmra.mxu1 %vm1633_vm14, %v1696_v34 }
 0xae7   :  { %v3783_v53 = vpop.eup %3782  ;;  %3635 = vmatmul.mubr.msk.f32.gmra.mxu0 %vm1633_vm14, %v1698_v36  ;;  %3645 = vmatpush3.msra.mxu1 %v3204_v45 }
 0xae8   :  { %3637 = vmatprep.mubr.msk.f32.mxu0 %vm3892_vm0, %v3891_v1  ;;  %v1699_v56 = vmul.f32 %v3783_v53, %v3771_v24  ;;  %3646 = vmatprep.subr.mxu1 %v3203_v51  ;;  %vm3031_vm0 = vcmask 57344  }
 0xae9   :  { %3647 = vmatpush3.msra.mxu1 %v3203_v51 }
 0xaeb   :  { %3638 = vmatmul.mubr.msk.f32.gmra.mxu0 %vm1633_vm14, %v1699_v56 }
 0xb9e   :  { %v1784_v59 = vpop.f32.mrf.mxu1 }
 0xb9f   :  { %3648 = vmatprep.mubr.msk.f32.mxu1 %vm322_vm6, %v1784_v59 }
 0xba0   :  { %v3618_v60 = vpop.f32.mrf.mxu1 }
 0xba2   :  { %v1789_v61 = vpop.f32.mrf.mxu1 }
 0xba3   :  { %v1882_v63 = vpop.f32.mrf.mxu0  ;;  %3649 = vmatmul.mubr.msk.f32.vlgmr.msra.gmra.mxu1 %vm322_vm6, %v1789_v61 }
 0xba4   :  { %v3621_v5 = vpop.f32.mrf.mxu1 }
 0xba5   :  { %v3633_v6 = vpop.f32.mrf.mxu0 }
 0xba6   :  { %v1794_v9 = vpop.f32.mrf.mxu1 }
 0xba7   :  { %v1887_v11 = vpop.f32.mrf.mxu0  ;;  %3651 = vmatprep.mubr.msk.f32.mxu1 %vm322_vm6, %v1794_v9 }
 0xba8   :  { %v3624_v62 = vpop.f32.mrf.mxu1  ;;  %3652 = vmatmul.mubr.msk.f32.gmra.mxu1 %vm322_vm6, %v1882_v63 }
 0xba9   :  { %v3636_v3 = vpop.f32.mrf.mxu0  ;;  %3654 = vmatprep.mubr.msk.f32.mxu1 %vm322_vm6, %v1887_v11 }
 0xbab   :  { %v1892_v13 = vpop.f32.mrf.mxu0 }
 0xbac   :  { %3655 = vmatmul.mubr.msk.f32.gmra.mxu1 %vm322_vm6, %v1892_v13 }
 0xbad   :  { %v3639_v15 = vpop.f32.mrf.mxu0 }
 0xc63   :  { %v3650_v20 = vpop.f32.mrf.mxu1 }
 0xc64   :  { %v1990_v24 = vadd.f32 %v3650_v20, %v1899_v18 }
 0xc65   :  { %v1984_v25 = vpop.f32.mrf.mxu1 }
 0xc66   :  { %v1985_v26 = vadd.f32 %v1984_v25, %v1899_v18  ;;  %v2014_v27 = vadd.f32 %v1990_v24, %v4082_v10 }
 0xc68   :  { %v3653_v28 = vpop.f32.mrf.mxu1  ;;  %v2022_v29 = vsel %vm322_vm6, %v2014_v27, 0.0  ;;  %v2013_v31 = vadd.f32 %v1985_v26, %v4080_v16 }
 0xc69   :  { %2023 = vadd.xlane.f32.xlu1 %v2022_v29  ;;  %v2000_v41 = vadd.f32 %v3653_v28, %v1899_v18  ;;  %v3267_v29 = vld [vmem:[#allocation2 + $0x98] sm:$0xff]  }
 0xc6a   :  { %v1994_v35 = vpop.f32.mrf.mxu1  ;;  %v2019_v37 = vsel %vm322_vm6, %v2013_v31, 0.0 }
 0xc6b   :  { %v1995_v42 = vadd.f32 %v1994_v35, %v1899_v18  ;;  %2020 = vadd.xlane.f32.xlu0 %v2019_v37  ;;  %v2016_v46 = vadd.f32 %v2000_v41, %v4088_v17  ;;  %v3215_v35 = vunpack.c.l.bf16 %v3267_v29  ;;  %v3266_v37 = vld [vmem:[#allocation2 + $0x90] sm:$0xff]  }
 0xc6c   :  { %v3656_v58 = vpop.f32.mrf.mxu1  ;;  %v3212_v41 = vunpack.c.h.bf16 %v3266_v37 }
 0xc6d   :  { %v2015_v40 = vadd.f32 %v1995_v42, %v4084_v14  ;;  %v2010_v54 = vadd.f32 %v3656_v58, %v1899_v18  ;;  %v2028_v47 = vsel %vm322_vm6, %v2016_v46, 0.0  ;;  %v3211_v42 = vunpack.c.l.bf16 %v3266_v37  ;;  %v3275_v58 = vld [vmem:[#allocation2 + $0xd8] sm:$0xff]  }
 0xc6e   :  { %v2004_v43 = vpop.f32.mrf.mxu1 }
 0xc6f   :  { %v2005_v44 = vadd.f32 %v2004_v43, %v1899_v18  ;;  %v2025_v10 = vsel %vm322_vm6, %v2015_v40, 0.0  ;;  %v2018_v50 = vadd.f32 %v2010_v54, %v4092_v21  ;;  %v3248_v43 = vunpack.c.h.bf16 %v3275_v58 }
 0xc70   :  { %2026 = vadd.xlane.f32.xlu0 %v2025_v10  ;;  %v3247_v54 = vunpack.c.l.bf16 %v3275_v58  ;;  %v3273_v10 = vld [vmem:[#allocation2 + $0xc8] sm:$0xff]  }
 0xc71   :  { %v2017_v16 = vadd.f32 %v2005_v44, %v4090_v19  ;;  %v2034_v14 = vsel %vm322_vm6, %v2018_v50, 0.0  ;;  %3674 = vmatprep.subr.mxu1 %v3248_v43 }
 0xc72   :  { %3675 = vmatpush3.msra.mxu1 %v3248_v43 }
 0xc73   :  { %v2031_v30 = vsel %vm322_vm6, %v2017_v16, 0.0  ;;  %3676 = vmatprep.subr.mxu1 %v3247_v54 }
 0xc74   :  { %2029 = vadd.xlane.f32.xlu0 %v2028_v47  ;;  %2032 = vadd.xlane.f32.xlu1 %v2031_v30  ;;  %v3272_v47 = vld [vmem:[#allocation2 + $0xc0] sm:$0xff]   ;;  %v3239_v30 = vunpack.c.l.bf16 %v3273_v10 }
 0xc75   :  { %3677 = vmatpush3.msra.mxu1 %v3247_v54 }
 0xc78   :  { %2035 = vadd.xlane.f32.xlu0 %v2034_v14  ;;  %v3271_v14 = vld [vmem:[#allocation2 + $0xb8] sm:$0xff]  }
 0xcf2   :  { %v2024_v52 = vpop.xlane.xlu1 %2023 }
 0xcf3   :  { %v2038_v34 = vmul.f32 0.03125, %v2024_v52  ;;  %v3235_v52 = vunpack.c.l.bf16 %v3272_v47 }
 0xcf4   :  { %v2021_v36 = vpop.xlane.xlu0 %2020 }
 0xcf5   :  { %v4322_v53 = vsub.f32 %v2014_v27, %v2038_v34  ;;  %v2037_v17 = vmul.f32 0.03125, %v2021_v36  ;;  %v3232_v34 = vunpack.c.h.bf16 %v3271_v14  ;;  %v3270_v36 = vld [vmem:[#allocation2 + $0xb0] sm:$0xff]  }
 0xcf7   :  { %v4324_v56 = vsub.f32 %v2013_v31, %v2037_v17  ;;  %v2050_v19 = vmul.f32 %v4322_v53, %v4322_v53  ;;  %v3216_v31 = vunpack.c.h.bf16 %v3267_v29  ;;  %v3231_v17 = vunpack.c.l.bf16 %v3271_v14 }
 0xcf9   :  { %v2027_v49 = vpop.xlane.xlu0 %2026  ;;  %v2058_v45 = vsel %vm322_vm6, %v2050_v19, 0.0  ;;  %v2049_v21 = vmul.f32 %v4324_v56, %v4324_v56  ;;  %3657 = vmatprep.subr.mxu0 %v3216_v31  ;;  %v3228_v19 = vunpack.c.h.bf16 %v3270_v36 }
 0xcfa   :  { %v2039_v51 = vmul.f32 0.03125, %v2027_v49  ;;  %2059 = vadd.xlane.f32.xlu0 %v2058_v45  ;;  %3658 = vmatpush3.msra.mxu0 %v3216_v31  ;;  %v3227_v49 = vunpack.c.l.bf16 %v3270_v36 }
 0xcfb   :  { %v2055_v59 = vsel %vm322_vm6, %v2049_v21, 0.0  ;;  %3659 = vmatprep.subr.mxu0 %v3215_v35 }
 0xcfc   :  { %v4332_v60 = vsub.f32 %v2015_v40, %v2039_v51  ;;  %2056 = vadd.xlane.f32.xlu1 %v2055_v59  ;;  %3660 = vmatpush3.msra.mxu0 %v3215_v35  ;;  %v3274_v40 = vld [vmem:[#allocation2 + $0xd0] sm:$0xff]   ;;  %v2110_v35 = vrot.slane %v4186_v33, %v985_v48 }
 0xcfd   :  { %v2030_v61 = vpop.xlane.xlu0 %2029  ;;  %v2033_v63 = vpop.xlane.xlu1 %2032  ;;  %3661 = vmatprep.subr.mxu0 %v3212_v41  ;;  %v3244_v44 = vunpack.c.h.bf16 %v3274_v40 }
 0xcfe   :  { %v2040_v5 = vmul.f32 0.03125, %v2030_v61  ;;  %v2041_v6 = vmul.f32 0.03125, %v2033_v63  ;;  %v2051_v9 = vmul.f32 %v4332_v60, %v4332_v60  ;;  %3662 = vmatpush3.msra.mxu0 %v3212_v41 }
 0xcff   :  { %3663 = vmatprep.subr.mxu0 %v3211_v42  ;;  %3678 = vmatprep.subr.mxu1 %v3244_v44 }
 0xd00   :  { %v4336_v11 = vsub.f32 %v2016_v46, %v2040_v5  ;;  %v4338_v62 = vsub.f32 %v2017_v16, %v2041_v6  ;;  %v2061_v3 = vsel %vm322_vm6, %v2051_v9, 0.0  ;;  %3664 = vmatpush3.msra.mxu0 %v3211_v42  ;;  %v3243_v46 = vunpack.c.l.bf16 %v3274_v40  ;;  %3679 = vmatpush3.msra.mxu1 %v3244_v44 }
 0xd01   :  { %v2036_v13 = vpop.xlane.xlu0 %2035  ;;  %2062 = vadd.xlane.f32.xlu1 %v2061_v3  ;;  %v3240_v16 = vunpack.c.h.bf16 %v3273_v10 }
 0xd02   :  { %v2042_v15 = vmul.f32 0.03125, %v2036_v13  ;;  %v2052_v18 = vmul.f32 %v4336_v11, %v4336_v11  ;;  %v2053_v20 = vmul.f32 %v4338_v62, %v4338_v62  ;;  %3680 = vmatprep.subr.mxu1 %v3243_v46 }
 0xd03   :  { %3681 = vmatpush3.msra.mxu1 %v3243_v46 }
 0xd04   :  { %v4345_v24 = vsub.f32 %v2018_v50, %v2042_v15  ;;  %v2064_v25 = vsel %vm322_vm6, %v2052_v18, 0.0  ;;  %v2067_v26 = vsel %vm322_vm6, %v2053_v20, 0.0  ;;  %3682 = vmatprep.subr.mxu1 %v3240_v16  ;;  %v3236_v50 = vunpack.c.h.bf16 %v3272_v47 }
 0xd05   :  { %2065 = vadd.xlane.f32.xlu0 %v2064_v25  ;;  %2068 = vadd.xlane.f32.xlu1 %v2067_v26 }
 0xd06   :  { %v2054_v27 = vmul.f32 %v4345_v24, %v4345_v24  ;;  %3683 = vmatpush3.msra.mxu1 %v3240_v16 }
 0xd07   :  { %3684 = vmatprep.subr.mxu1 %v3239_v30 }
 0xd08   :  { %v2070_v28 = vsel %vm322_vm6, %v2054_v27, 0.0  ;;  %3685 = vmatpush3.msra.mxu1 %v3239_v30 }
 0xd09   :  { %2071 = vadd.xlane.f32.xlu0 %v2070_v28  ;;  %3686 = vmatprep.subr.mxu1 %v3236_v50  ;;  %v2100_v28 = vrot.slane %v4186_v33, %v977_v32 }
 0xd0a   :  { %3687 = vmatpush3.msra.mxu1 %v3236_v50 }
 0xd0b   :  { %3688 = vmatprep.subr.mxu1 %v3235_v52 }
 0xd0c   :  { %3689 = vmatpush3.msra.mxu1 %v3235_v52 }
 0xd0d   :  { %3690 = vmatprep.subr.mxu1 %v3232_v34 }
 0xd0e   :  { %3691 = vmatpush3.msra.mxu1 %v3232_v34 }
 0xd0f   :  { %3692 = vmatprep.subr.mxu1 %v3231_v17 }
 0xd10   :  { %3693 = vmatpush3.msra.mxu1 %v3231_v17  ;;  %v3268_v17 = vld [vmem:[#allocation2 + $0xa0] sm:$0xff]  }
 0xd11   :  { %3694 = vmatprep.subr.mxu1 %v3228_v19 }
 0xd12   :  { %3695 = vmatpush3.msra.mxu1 %v3228_v19  ;;  %v3220_v19 = vunpack.c.h.bf16 %v3268_v17 }
 0xd13   :  { %3696 = vmatprep.subr.mxu1 %v3227_v49 }
 0xd14   :  { %3697 = vmatpush3.msra.mxu1 %v3227_v49  ;;  %v3219_v49 = vunpack.c.l.bf16 %v3268_v17 }
 0xd83   :  { %v2060_v45 = vpop.xlane.xlu0 %2059 }
 0xd84   :  { %v2074_v21 = vmul.f32 0.03125, %v2060_v45  ;;  %v2120_v45 = vrot.slane %v4186_v33, %v993_v22 }
 0xd85   :  { %v2057_v51 = vpop.xlane.xlu1 %2056 }
 0xd86   :  { %v2080_v59 = vadd.f32 1e-05, %v2074_v21  ;;  %v2073_v61 = vmul.f32 0.03125, %v2057_v51 }
 0xd88   :  { %3784 = vrsqrt.f32 %v2080_v59  ;;  %v2079_v63 = vadd.f32 1e-05, %v2073_v61 }
 0xd8a   :  { %3786 = vrsqrt.f32 %v2079_v63  ;;  %v2063_v5 = vpop.xlane.xlu1 %2062 }
 0xd8b   :  { %v2075_v6 = vmul.f32 0.03125, %v2063_v5 }
 0xd8d   :  { %v2081_v9 = vadd.f32 1e-05, %v2075_v6 }
 0xd8e   :  { %v2066_v3 = vpop.xlane.xlu0 %2065  ;;  %v2069_v13 = vpop.xlane.xlu1 %2068 }
 0xd8f   :  { %3788 = vrsqrt.f32 %v2081_v9  ;;  %v2076_v15 = vmul.f32 0.03125, %v2066_v3  ;;  %v2077_v18 = vmul.f32 0.03125, %v2069_v13 }
 0xd91   :  { %v2082_v20 = vadd.f32 1e-05, %v2076_v15  ;;  %v2083_v25 = vadd.f32 1e-05, %v2077_v18 }
 0xd92   :  { %v2072_v26 = vpop.xlane.xlu0 %2071 }
 0xd93   :  { %3790 = vrsqrt.f32 %v2082_v20  ;;  %v2078_v27 = vmul.f32 0.03125, %v2072_v26 }
 0xd94   :  { %3792 = vrsqrt.f32 %v2083_v25 }
 0xd95   :  { %v3785_v29 = vpop.eup %3784  ;;  %v2084_v31 = vadd.f32 1e-05, %v2078_v27 }
 0xd96   :  { %v2092_v37 = vmul.f32 %v3785_v29, %v4322_v53  ;;  %v1098_v29 = vsub.s32 5, %v3983_v38 }
 0xd97   :  { %v3787_v41 = vpop.eup %3786  ;;  %3794 = vrsqrt.f32 %v2084_v31 }
 0xd98   :  { %v2102_v42 = vmul.f32 %v2100_v28, %v2092_v37  ;;  %v2091_v58 = vmul.f32 %v3787_v41, %v4324_v56 }
 0xd9a   :  { %v2101_v40 = vmul.f32 %v2100_v28, %v2091_v58  ;;  %v4360_v43 = vadd.f32 %v2110_v35, %v2102_v42 }
 0xd9c   :  { %v3789_v54 = vpop.eup %3788  ;;  %v4362_v44 = vadd.f32 %v2110_v35, %v2101_v40 }
 0xd9d   :  { %v2093_v32 = vmul.f32 %v3789_v54, %v4332_v60 }
 0xd9e   :  { %3665 = vmatprep.mubr.msk.f32.mxu0 %vm322_vm6, %v4362_v44 }
 0xd9f   :  { %3666 = vmatmul.mubr.msk.f32.vlgmr.msra.gmra.mxu0 %vm322_vm6, %v4360_v43  ;;  %v2103_v48 = vmul.f32 %v2100_v28, %v2093_v32 }
 0xda0   :  { %v3791_v53 = vpop.eup %3790 }
 0xda1   :  { %v3793_v10 = vpop.eup %3792  ;;  %v4369_v46 = vadd.f32 %v2110_v35, %v2103_v48  ;;  %v2094_v56 = vmul.f32 %v3791_v53, %v4336_v11  ;;  %v4399_v48 = vld [vmem:[%s4527_s2] sm:$0xff] }
 0xda2   :  { %v2095_v16 = vmul.f32 %v3793_v10, %v4338_v62  ;;  %v3269_v62 = vld [vmem:[#allocation2 + $0xa8] sm:$0xff]   ;;  %v1099_v53 = vrot.slane %v4399_v48, %v1098_v29 }
 0xda3   :  { %3668 = vmatprep.mubr.msk.f32.mxu0 %vm322_vm6, %v4369_v46  ;;  %v2104_v47 = vmul.f32 %v2100_v28, %v2094_v56  ;;  %v3224_v36 = vunpack.c.h.bf16 %v3269_v62 }
 0xda4   :  { %v3795_v60 = vpop.eup %3794  ;;  %v2105_v30 = vmul.f32 %v2100_v28, %v2095_v16  ;;  %v1167_v16 = vadd.f32 %v4254_v2, %v1099_v53 }
 0xda5   :  { %v4375_v50 = vadd.f32 %v2110_v35, %v2104_v47  ;;  %v2096_v14 = vmul.f32 %v3795_v60, %v4345_v24  ;;  %3698 = vmatprep.subr.mxu1 %v3224_v36  ;;  %v3223_v24 = vunpack.c.l.bf16 %v3269_v62 }
 0xda6   :  { %v4378_v52 = vadd.f32 %v2110_v35, %v2105_v30  ;;  %3699 = vmatpush3.msra.mxu1 %v3224_v36  ;;  %v1185_v17 = vadd.f32 %v1167_v16, %v4142_v55 }
 0xda7   :  { %3669 = vmatmul.mubr.msk.f32.gmra.mxu0 %vm322_vm6, %v4375_v50  ;;  %v2106_v34 = vmul.f32 %v2100_v28, %v2096_v14  ;;  %3700 = vmatprep.subr.mxu1 %v3223_v24 }
 0xda8   :  { %3671 = vmatprep.mubr.msk.f32.mxu0 %vm322_vm6, %v4378_v52  ;;  %3701 = vmatpush3.msra.mxu1 %v3223_v24 }
 0xda9   :  { %v4384_v11 = vadd.f32 %v2110_v35, %v2106_v34  ;;  %3702 = vmatprep.subr.mxu1 %v3220_v19  ;;  %v2243_v35 = vrot.slane %v4186_v33, %v1098_v29 }
 0xdaa   :  { %3703 = vmatpush3.msra.mxu1 %v3220_v19  ;;  %v1172_v19 = vadd.f32 %v4252_v0, %v1099_v53 }
 0xdab   :  { %3672 = vmatmul.mubr.msk.f32.gmra.mxu0 %vm322_vm6, %v4384_v11  ;;  %3704 = vmatprep.subr.mxu1 %v3219_v49 }
 0xdac   :  { %2613 = vmatprep.mubr.f32.mxu0 %v3891_v1  ;;  %3705 = vmatpush3.msra.mxu1 %v3219_v49  ;;  %v1189_v49 = vsel %vm322_vm6, %v1185_v17, 0.0 }
 0xe5f   :  { %v3667_v21 = vpop.f32.mrf.mxu0 }
 0xe60   :  { %v2211_v51 = vadd.f32 %v3667_v21, %v2120_v45  ;;  %v1186_v21 = vadd.f32 %v1172_v19, %v4144_v57 }
 0xe61   :  { %v2205_v59 = vpop.f32.mrf.mxu0 }
 0xe62   :  { %v2206_v61 = vadd.f32 %v2205_v59, %v2120_v45  ;;  %v2235_v5 = vmax.f32 %v2211_v51, 0.0  ;;  %v1192_v0 = vsel %vm322_vm6, %v1186_v21, 0.0 }
 0xe64   :  { %v2234_v63 = vmax.f32 %v2206_v61, 0.0 }
 0xe66   :  { %3706 = vmatprep.mubr.f32.mxu1 %v2234_v63 }
 0xe67   :  { %v3670_v6 = vpop.f32.mrf.mxu0  ;;  %3707 = vmatmul.mubr.f32.vlgmr.msra.gmra.mxu1 %v2235_v5 }
 0xe68   :  { %v2221_v9 = vadd.f32 %v3670_v6, %v2120_v45 }
 0xe69   :  { %v2215_v3 = vpop.f32.mrf.mxu0 }
 0xe6a   :  { %v2216_v13 = vadd.f32 %v2215_v3, %v2120_v45  ;;  %v2237_v20 = vmax.f32 %v2221_v9, 0.0 }
 0xe6b   :  { %v3673_v15 = vpop.f32.mrf.mxu0 }
 0xe6c   :  { %v2236_v18 = vmax.f32 %v2216_v13, 0.0  ;;  %v2231_v25 = vadd.f32 %v3673_v15, %v2120_v45 }
 0xe6d   :  { %v2225_v26 = vpop.f32.mrf.mxu0 }
 0xe6e   :  { %v2226_v27 = vadd.f32 %v2225_v26, %v2120_v45  ;;  %3709 = vmatprep.mubr.f32.mxu1 %v2236_v18  ;;  %v2239_v28 = vmax.f32 %v2231_v25, 0.0 }
 0xe6f   :  { %3710 = vmatmul.mubr.f32.gmra.mxu1 %v2237_v20 }
 0xe70   :  { %v2238_v22 = vmax.f32 %v2226_v27, 0.0 }
 0xe72   :  { %3712 = vmatprep.mubr.f32.mxu1 %v2238_v22 }
 0xe73   :  { %3713 = vmatmul.mubr.f32.gmra.mxu1 %v2239_v28 }
 0xf27   :  { %v3708_v31 = vpop.f32.mrf.mxu1 }
 0xf28   :  { %v2316_v54 = vadd.f32 %v3708_v31, %v2243_v35 }
 0xf29   :  { %v2310_v37 = vpop.f32.mrf.mxu1 }
 0xf2a   :  { %v2311_v41 = vadd.f32 %v2310_v37, %v2243_v35  ;;  %v2340_v14 = vadd.f32 %v2316_v54, %v4360_v43 }
 0xf2c   :  { %v2339_v42 = vadd.f32 %v2311_v41, %v4362_v44  ;;  %v2348_v2 = vsel %vm322_vm6, %v2340_v14, 0.0 }
 0xf2e   :  { %v2345_v58 = vsel %vm322_vm6, %v2339_v42, 0.0 }
 0xf2f   :  { %v3711_v40 = vpop.f32.mrf.mxu1  ;;  %2346 = vadd.xlane.f32.xlu1 %v2345_v58 }
 0xf30   :  { %v2326_v32 = vadd.f32 %v3711_v40, %v2243_v35 }
 0xf31   :  { %v2320_v10 = vpop.f32.mrf.mxu1 }
 0xf32   :  { %v2321_v56 = vadd.f32 %v2320_v10, %v2243_v35  ;;  %v2342_v33 = vadd.f32 %v2326_v32, %v4375_v50  ;;  %v1177_v50 = vadd.f32 %v4259_v7, %v1099_v53 }
 0xf33   :  { %v3714_v44 = vpop.f32.mrf.mxu1 }
 0xf34   :  { %v2336_v47 = vadd.f32 %v3714_v44, %v2243_v35  ;;  %v2354_v60 = vsel %vm322_vm6, %v2342_v33, 0.0  ;;  %v2341_v30 = vadd.f32 %v2321_v56, %v4369_v46  ;;  %v1187_v45 = vadd.f32 %v1177_v50, %v4155_v8 }
 0xf35   :  { %v2330_v34 = vpop.f32.mrf.mxu1  ;;  %2355 = vadd.xlane.f32.xlu1 %v2354_v60 }
 0xf36   :  { %v2331_v62 = vadd.f32 %v2330_v34, %v2243_v35  ;;  %v2351_v36 = vsel %vm322_vm6, %v2341_v30, 0.0  ;;  %v2344_v24 = vadd.f32 %v2336_v47, %v4384_v11  ;;  %v1182_v11 = vadd.f32 %v4256_v4, %v1099_v53 }
 0xf37   :  { %2352 = vadd.xlane.f32.xlu0 %v2351_v36  ;;  %v1195_v55 = vsel %vm322_vm6, %v1187_v45, 0.0 }
 0xf38   :  { %v2360_v46 = vsel %vm322_vm6, %v2344_v24, 0.0  ;;  %v2343_v43 = vadd.f32 %v2331_v62, %v4378_v52  ;;  %v1188_v52 = vadd.f32 %v1182_v11, %v4160_v12 }
 0xf39   :  { %2349 = vadd.xlane.f32.xlu1 %v2348_v2 }
 0xf3a   :  { %v2357_v7 = vsel %vm322_vm6, %v2343_v43, 0.0  ;;  %v1198_v51 = vsel %vm322_vm6, %v1188_v52, 0.0 }
 0xf3b   :  { %2361 = vadd.xlane.f32.xlu0 %v2360_v46 }
 0xf3d   :  { %1190 = vadd.xlane.f32.xlu1 %v1189_v49  ;;  %v2513_v49 = vld [vmem:[#allocation5 + $0x70] sm:$0xff] }
 0xf3e   :  { %v2528_v11 = vunpack.c.h.bf16 %v2513_v49 }
 0xf3f   :  { %2358 = vadd.xlane.f32.xlu0 %v2357_v7  ;;  %v2511_v7 = vld [vmem:[#allocation5 + $0x60] sm:$0xff] }
 0xf40   :  { %2573 = vmatprep.subr.mxu0 %v2528_v11 }
 0xf41   :  { %1196 = vadd.xlane.f32.xlu1 %v1195_v55  ;;  %v2523_v55 = vunpack.c.l.bf16 %v2511_v7 }
 0xf43   :  { %1193 = vadd.xlane.f32.xlu0 %v1192_v0  ;;  %v2524_v0 = vunpack.c.h.bf16 %v2511_v7 }
 0xf47   :  { %1199 = vadd.xlane.f32.xlu0 %v1198_v51  ;;  %v2507_v51 = vld [vmem:[#allocation5 + $0x40] sm:$0xff] }
 0xfb8   :  { %v2347_v8 = vpop.xlane.xlu1 %2346 }
 0xfb9   :  { %v2363_v59 = vmul.f32 0.03125, %v2347_v8 }
 0xfbb   :  { %v4424_v61 = vsub.f32 %v2339_v42, %v2363_v59  ;;  %v4474_v59 = vld [vmem:[#allocation5 + $0x78] sm:$0xff] }
 0xfbd   :  { %v2375_v4 = vmul.f32 %v4424_v61, %v4424_v61 }
 0xfbe   :  { %v2356_v57 = vpop.xlane.xlu1 %2355 }
 0xfbf   :  { %v2366_v63 = vmul.f32 0.03125, %v2356_v57  ;;  %v2381_v5 = vsel %vm322_vm6, %v2375_v4, 0.0  ;;  %v2516_v4 = vunpack.c.h.bf16 %v2507_v51  ;;  %v2515_v57 = vunpack.c.l.bf16 %v2507_v51 }
 0xfc0   :  { %v2353_v6 = vpop.xlane.xlu0 %2352  ;;  %2382 = vadd.xlane.f32.xlu1 %v2381_v5 }
 0xfc1   :  { %v4429_v9 = vsub.f32 %v2342_v33, %v2366_v63  ;;  %v2365_v12 = vmul.f32 0.03125, %v2353_v6  ;;  %v2530_v63 = vunpack.c.h.bf16 %v4474_v59 }
 0xfc2   :  { %v2350_v3 = vpop.xlane.xlu1 %2349 }
 0xfc3   :  { %v4431_v13 = vsub.f32 %v2341_v30, %v2365_v12  ;;  %v2364_v15 = vmul.f32 0.03125, %v2350_v3  ;;  %v2378_v18 = vmul.f32 %v4429_v9, %v4429_v9 }
 0xfc4   :  { %v2362_v20 = vpop.xlane.xlu0 %2361 }
 0xfc5   :  { %v4435_v25 = vsub.f32 %v2340_v14, %v2364_v15  ;;  %v2368_v26 = vmul.f32 0.03125, %v2362_v20  ;;  %v2390_v27 = vsel %vm322_vm6, %v2378_v18, 0.0  ;;  %v2377_v22 = vmul.f32 %v4431_v13, %v4431_v13 }
 0xfc6   :  { %2391 = vadd.xlane.f32.xlu1 %v2390_v27  ;;  %v1191_v28 = vpop.xlane.xlu1 %1190 }
 0xfc7   :  { %v4440_v29 = vsub.f32 %v2344_v24, %v2368_v26  ;;  %v1201_v31 = vmul.f32 0.03125, %v1191_v28  ;;  %v2387_v35 = vsel %vm322_vm6, %v2377_v22, 0.0  ;;  %v2376_v37 = vmul.f32 %v4435_v25, %v4435_v25 }
 0xfc8   :  { %2388 = vadd.xlane.f32.xlu0 %v2387_v35  ;;  %v2359_v41 = vpop.xlane.xlu0 %2358 }
 0xfc9   :  { %v4445_v42 = vsub.f32 %v1185_v17, %v1201_v31  ;;  %v2367_v58 = vmul.f32 0.03125, %v2359_v41  ;;  %v2384_v40 = vsel %vm322_vm6, %v2376_v37, 0.0  ;;  %v2380_v54 = vmul.f32 %v4440_v29, %v4440_v29 }
 0xfca   :  { %2385 = vadd.xlane.f32.xlu1 %v2384_v40  ;;  %v1197_v32 = vpop.xlane.xlu1 %1196 }
 0xfcb   :  { %v4450_v53 = vsub.f32 %v2343_v43, %v2367_v58  ;;  %v1203_v10 = vmul.f32 0.03125, %v1197_v32  ;;  %v2396_v56 = vsel %vm322_vm6, %v2380_v54, 0.0  ;;  %v1209_v33 = vmul.f32 %v4445_v42, %v4445_v42 }
 0xfcc   :  { %2397 = vadd.xlane.f32.xlu0 %v2396_v56  ;;  %v1194_v16 = vpop.xlane.xlu0 %1193  ;;  %v1243_v54 = vsub.s32 6, %v3983_v38 }
 0xfcd   :  { %v4455_v44 = vsub.f32 %v1187_v45, %v1203_v10  ;;  %v1202_v47 = vmul.f32 0.03125, %v1194_v16  ;;  %v1213_v60 = vsel %vm322_vm6, %v1209_v33, 0.0  ;;  %v2379_v30 = vmul.f32 %v4450_v53, %v4450_v53 }
 0xfce   :  { %1214 = vadd.xlane.f32.xlu1 %v1213_v60  ;;  %v2527_v45 = vunpack.c.l.bf16 %v2513_v49 }
 0xfcf   :  { %v4460_v14 = vsub.f32 %v1186_v21, %v1202_v47  ;;  %v2393_v34 = vsel %vm322_vm6, %v2379_v30, 0.0  ;;  %v1211_v62 = vmul.f32 %v4455_v44, %v4455_v44  ;;  %v2509_v21 = vld [vmem:[#allocation5 + $0x50] sm:$0xff]  ;;  %v1251_v30 = vsub.s32 7, %v3983_v38 }
 0xfd0   :  { %2394 = vadd.xlane.f32.xlu0 %v2393_v34  ;;  %v1200_v36 = vpop.xlane.xlu0 %1199  ;;  %2574 = vmatpush1.msra.mxu0 %v2527_v45  ;;  %v2519_v8 = vunpack.c.l.bf16 %v2509_v21  ;;  %v3817_v34 = vld [vmem:[%s4527_s2 + $0x8] sm:$0xff]  ;;  %s3895_s2 = smov [#allocation7]  }
 0xfd1   :  { %v1204_v24 = vmul.f32 0.03125, %v1200_v36  ;;  %v1219_v50 = vsel %vm322_vm6, %v1211_v62, 0.0  ;;  %v1210_v2 = vmul.f32 %v4460_v14, %v4460_v14  ;;  %2575 = vmatprep.subr.mxu0 %v2524_v0  ;;  %v2426_v62 = vrot.slane %v3817_v34, %v1243_v54  ;;  %s3039_s29 = sshll.u32 %s3895_s2, 4  ;;  %s3040_s29 = int_to_ptr.vmem [resolvable:$true] %s3039_s29 }
 0xfd2   :  { %1220 = vadd.xlane.f32.xlu1 %v1219_v50  ;;  %2576 = vmatpush1.msra.mxu0 %v2523_v55  ;;  %s3858_s30 = scalar_lea.vmem %s3040_s29, 32  ;;  %p3863_p11 = scmp.lt.s32.totalorder %s3040_s29, %s3040_s29 }
 0xfd3   :  { %v4468_v17 = vsub.f32 %v1188_v52, %v1204_v24  ;;  %v1216_v19 = vsel %vm322_vm6, %v1210_v2, 0.0  ;;  %v2520_v52 = vunpack.c.h.bf16 %v2509_v21  ;;  %p3859_p10 = scmp.ne.s32.totalorder %s3040_s29, %s3858_s30  ;;  %p3864_p12 = scmp.lt.s32.totalorder %s3858_s30, %s3858_s30 }
 0xfd4   :  { %1217 = vadd.xlane.f32.xlu0 %v1216_v19 }
 0xfd5   :  { %v1212_v46 = vmul.f32 %v4468_v17, %v4468_v17  ;;  %2577 = vmatprep.subr.mxu0 %v2520_v52  ;;  %p3865_p13 = por %p3864_p12, %p3863_p11 }
 0xfd6   :  { %2578 = vmatpush1.msra.mxu0 %v2519_v8 }
 0xfd7   :  { %v1222_v43 = vsel %vm322_vm6, %v1212_v46, 0.0  ;;  %2579 = vmatprep.subr.mxu0 %v2516_v4  ;;  %p3866_p0 = pnand %p3865_p13, %p3859_p10 }
 0xfd8   :  { %1223 = vadd.xlane.f32.xlu0 %v1222_v43  ;;  %2580 = vmatpush1.msra.mxu0 %v2515_v57  ;;  %v2436_v43 = vrot.slane %v3817_v34, %v1251_v30 }
 0xfd9   :  { %2644 = vmatprep.subr.mxu0 %v2530_v63 }
0x1049   :  { %v2383_v5 = vpop.xlane.xlu1 %2382 }
0x104a   :  { %v2399_v6 = vmul.f32 0.03125, %v2383_v5 }
0x104c   :  { %v2405_v12 = vadd.f32 1e-05, %v2399_v6 }
0x104e   :  { %3796 = vrsqrt.f32 %v2405_v12 }
0x104f   :  { %v2392_v3 = vpop.xlane.xlu1 %2391 }
0x1050   :  { %v2402_v15 = vmul.f32 0.03125, %v2392_v3 }
0x1051   :  { %v2389_v18 = vpop.xlane.xlu0 %2388 }
0x1052   :  { %v2408_v20 = vadd.f32 1e-05, %v2402_v15  ;;  %v2401_v26 = vmul.f32 0.03125, %v2389_v18 }
0x1053   :  { %v2386_v27 = vpop.xlane.xlu1 %2385 }
0x1054   :  { %3798 = vrsqrt.f32 %v2408_v20  ;;  %v2407_v22 = vadd.f32 1e-05, %v2401_v26  ;;  %v2400_v28 = vmul.f32 0.03125, %v2386_v27 }
0x1055   :  { %v2398_v31 = vpop.xlane.xlu0 %2397 }
0x1056   :  { %3800 = vrsqrt.f32 %v2407_v22  ;;  %v2406_v35 = vadd.f32 1e-05, %v2400_v28  ;;  %v2404_v37 = vmul.f32 0.03125, %v2398_v31 }
0x1057   :  { %v1215_v41 = vpop.xlane.xlu1 %1214 }
0x1058   :  { %3802 = vrsqrt.f32 %v2406_v35  ;;  %v2410_v58 = vadd.f32 1e-05, %v2404_v37  ;;  %v1225_v40 = vmul.f32 0.03125, %v1215_v41  ;;  %v1252_v35 = vrot.slane %v4399_v48, %v1251_v30 }
0x1059   :  { %v2395_v32 = vpop.xlane.xlu0 %2394 }
0x105a   :  { %3804 = vrsqrt.f32 %v2410_v58  ;;  %v1229_v10 = vadd.f32 1e-05, %v1225_v40  ;;  %v2403_v56 = vmul.f32 0.03125, %v2395_v32 }
0x105b   :  { %v3797_v33 = vpop.eup %3796  ;;  %v1221_v16 = vpop.xlane.xlu1 %1220 }
0x105c   :  { %3806 = vrsqrt.f32 %v1229_v10  ;;  %v2409_v47 = vadd.f32 1e-05, %v2403_v56  ;;  %v1227_v60 = vmul.f32 0.03125, %v1221_v16  ;;  %v2417_v36 = vmul.f32 %v3797_v33, %v4424_v61 }
0x105d   :  { %v1218_v24 = vpop.xlane.xlu0 %1217 }
0x105e   :  { %3808 = vrsqrt.f32 %v2409_v47  ;;  %v1231_v50 = vadd.f32 1e-05, %v1227_v60  ;;  %v1226_v2 = vmul.f32 0.03125, %v1218_v24  ;;  %v2427_v49 = vmul.f32 %v2426_v62, %v2417_v36 }
0x1060   :  { %3810 = vrsqrt.f32 %v1231_v50  ;;  %v1230_v19 = vadd.f32 1e-05, %v1226_v2  ;;  %v2437_v61 = vadd.f32 %v2436_v43, %v2427_v49 }
0x1061   :  { %v3799_v46 = vpop.eup %3798  ;;  %v1224_v45 = vpop.xlane.xlu0 %1223 }
0x1062   :  { %3812 = vrsqrt.f32 %v1230_v19  ;;  %v1228_v11 = vmul.f32 0.03125, %v1224_v45  ;;  %v2420_v21 = vmul.f32 %v3799_v46, %v4429_v9  ;;  %v2461_v3 = vsel %vm322_vm6, %v2437_v61, -inf }
0x1063   :  { %v3801_v7 = vpop.eup %3800  ;;  %v1244_v9 = vrot.slane %v4399_v48, %v1243_v54 }
0x1064   :  { %v2419_v55 = vmul.f32 %v3801_v7, %v4431_v13  ;;  %v1232_v0 = vadd.f32 1e-05, %v1228_v11  ;;  %v2430_v57 = vmul.f32 %v2426_v62, %v2420_v21 }
0x1065   :  { %v3803_v51 = vpop.eup %3802 }
0x1066   :  { %v2429_v52 = vmul.f32 %v2426_v62, %v2419_v55  ;;  %v2418_v8 = vmul.f32 %v3803_v51, %v4435_v25  ;;  %3814 = vrsqrt.f32 %v1232_v0  ;;  %v2440_v27 = vadd.f32 %v2436_v43, %v2430_v57 }
0x1067   :  { %v3805_v4 = vpop.eup %3804  ;;  %v2529_v57 = vunpack.c.l.bf16 %v4474_v59  ;;  %v2489_v59 = vld [vmem:[#allocation5 + $0x30] sm:$0xff] }
0x1068   :  { %v2439_v63 = vadd.f32 %v2436_v43, %v2429_v52  ;;  %v2428_v5 = vmul.f32 %v2426_v62, %v2418_v8  ;;  %v2422_v6 = vmul.f32 %v3805_v4, %v4440_v29  ;;  %v2472_v10 = vsel %vm322_vm6, %v2440_v27, -inf  ;;  %v2512_v8 = vld [vmem:[#allocation5 + $0x68] sm:$0xff] }
0x1069   :  { %v3807_v12 = vpop.eup %3806 }
0x106a   :  { %v2463_v13 = vsel %vm322_vm6, %v2439_v63, -inf  ;;  %v2438_v15 = vadd.f32 %v2436_v43, %v2428_v5  ;;  %v2432_v18 = vmul.f32 %v2426_v62, %v2422_v6  ;;  %v1237_v20 = vmul.f32 %v3807_v12, %v4445_v42  ;;  %v2510_v6 = vld [vmem:[#allocation5 + $0x58] sm:$0xff] }
0x106b   :  { %v3809_v26 = vpop.eup %3808  ;;  %v2464_v25 = vmax.f32 %v2461_v3, %v2463_v13 }
0x106c   :  { %v2442_v22 = vadd.f32 %v2436_v43, %v2432_v18  ;;  %v2421_v28 = vmul.f32 %v3809_v26, %v4450_v53  ;;  %v2462_v31 = vsel %vm322_vm6, %v2438_v15, -inf  ;;  %v1245_v58 = vmul.f32 %v1244_v9, %v1237_v20  ;;  %v2508_v18 = vld [vmem:[#allocation5 + $0x48] sm:$0xff] }
0x106d   :  { %v3811_v29 = vpop.eup %3810  ;;  %v2465_v37 = vmax.f32 %v2464_v25, %v2462_v31  ;;  %v2525_v15 = vunpack.c.l.bf16 %v2512_v8  ;;  %v2522_v26 = vunpack.c.h.bf16 %v2510_v6  ;;  %v2521_v25 = vunpack.c.l.bf16 %v2510_v6  ;;  %v2487_v31 = vld [vmem:[#allocation5 + $0x20] sm:$0xff]  ;;  %v2534_v6 = vld [vmem:[#allocation5 + $0x98] sm:$0xff] }
0x106e   :  { %v2474_v41 = vsel %vm322_vm6, %v2442_v22, -inf  ;;  %v2431_v40 = vmul.f32 %v2426_v62, %v2421_v28  ;;  %v1239_v54 = vmul.f32 %v3811_v29, %v4455_v44  ;;  %v1253_v30 = vadd.f32 %v1252_v35, %v1245_v58 }
0x106f   :  { %v3813_v32 = vpop.eup %3812  ;;  %v2466_v42 = vrot.slane %v2465_v37, 4  ;;  %v2475_v16 = vmax.f32 %v2472_v10, %v2474_v41  ;;  %v2518_v22 = vunpack.c.h.bf16 %v2508_v18  ;;  %v2517_v28 = vunpack.c.l.bf16 %v2508_v18  ;;  %v2485_v41 = vld [vmem:[#allocation5 + $0x10] sm:$0xff] }
0x1070   :  { %v2441_v56 = vadd.f32 %v2436_v43, %v2431_v40  ;;  %v1238_v33 = vmul.f32 %v3813_v32, %v4460_v14  ;;  %v1247_v47 = vmul.f32 %v1244_v9, %v1239_v54  ;;  %v2443_v46 = vsel %vm322_vm6, %v1253_v30, -inf  ;;  %v2483_v32 = vld [vmem:[#allocation5] sm:$0xff] }
0x1071   :  { %v2467_v53 = vmax.f32 %v2465_v37, %v2466_v42  ;;  %v2503_v37 = vunpack.c.l.bf16 %v2489_v59  ;;  %v2500_v40 = vunpack.c.h.bf16 %v2487_v31  ;;  %v2499_v54 = vunpack.c.l.bf16 %v2487_v31 }
0x1072   :  { %v1246_v60 = vmul.f32 %v1244_v9, %v1238_v33  ;;  %v2473_v48 = vsel %vm322_vm6, %v2441_v56, -inf  ;;  %v1255_v2 = vadd.f32 %v1252_v35, %v1247_v47  ;;  %v2496_v10 = vunpack.c.h.bf16 %v2485_v41 }
0x1073   :  { %v3815_v34 = vpop.eup %3814  ;;  %v2468_v36 = vrot.slane %v2467_v53, 2  ;;  %v2476_v24 = vmax.f32 %v2475_v16, %v2473_v48  ;;  %v2495_v56 = vunpack.c.l.bf16 %v2485_v41  ;;  %v2492_v16 = vunpack.c.h.bf16 %v2483_v32  ;;  %v2488_v48 = vld [vmem:[#allocation5 + $0x28] sm:$0xff] }
0x1074   :  { %v1240_v62 = vmul.f32 %v3815_v34, %v4468_v17  ;;  %v1254_v44 = vadd.f32 %v1252_v35, %v1246_v60  ;;  %v2452_v21 = vsel %vm322_vm6, %v1255_v2, -inf  ;;  %v2491_v47 = vunpack.c.l.bf16 %v2483_v32  ;;  %v2484_v2 = vld [vmem:[#allocation5 + $0x8] sm:$0xff] }
0x1075   :  { %v2477_v50 = vrot.slane %v2476_v24, 4  ;;  %v2469_v43 = vmax.f32 %v2467_v53, %v2468_v36  ;;  %v2490_v53 = vld [vmem:[#allocation5 + $0x38] sm:$0xff]  ;;  %v2542_v18 = vunpack.c.h.bf16 %v2534_v6 }
0x1076   :  { %v1248_v19 = vmul.f32 %v1244_v9, %v1240_v62  ;;  %v2444_v14 = vsel %vm322_vm6, %v1254_v44, -inf  ;;  %v2526_v9 = vunpack.c.h.bf16 %v2512_v8  ;;  %v2506_v30 = vunpack.c.h.bf16 %v2490_v53 }
0x1077   :  { %v2478_v49 = vmax.f32 %v2476_v24, %v2477_v50  ;;  %v2445_v45 = vmax.f32 %v2443_v46, %v2444_v14  ;;  %v2470_v0 = vrot.slane %v2469_v43, 1  ;;  %v2505_v36 = vunpack.c.l.bf16 %v2490_v53  ;;  %v2486_v24 = vld [vmem:[#allocation5 + $0x18] sm:$0xff] }
0x1078   :  { %v1256_v11 = vadd.f32 %v1252_v35, %v1248_v19  ;;  %v2504_v35 = vunpack.c.h.bf16 %v2489_v59  ;;  %v2502_v62 = vunpack.c.h.bf16 %v2488_v48  ;;  %v2501_v50 = vunpack.c.l.bf16 %v2488_v48 }
0x1079   :  { %v2479_v7 = vrot.slane %v2478_v49, 2  ;;  %v2446_v17 = vrot.slane %v2445_v45, 4  ;;  %v2471_v63 = vmax.f32 %v2469_v43, %v2470_v0  ;;  %v2498_v19 = vunpack.c.h.bf16 %v2486_v24 }
0x107a   :  { %v2453_v55 = vsel %vm322_vm6, %v1256_v11, -inf  ;;  %v2497_v46 = vunpack.c.l.bf16 %v2486_v24  ;;  %v2494_v14 = vunpack.c.h.bf16 %v2484_v2  ;;  %v2493_v43 = vunpack.c.l.bf16 %v2484_v2 }
0x107b   :  { %v2480_v51 = vmax.f32 %v2478_v49, %v2479_v7  ;;  %v2454_v61 = vmax.f32 %v2452_v21, %v2453_v55  ;;  %v2447_v12 = vmax.f32 %v2445_v45, %v2446_v17  ;;  %v2531_v49 = vld [vmem:[#allocation5 + $0x80] sm:$0xff]  ;;  %v2532_v7 = vld [vmem:[#allocation5 + $0x88] sm:$0xff] }
0x107c   :  { %v2536_v45 = vunpack.c.h.bf16 %v2531_v49  ;;  %v2535_v11 = vunpack.c.l.bf16 %v2531_v49  ;;  %v2538_v21 = vunpack.c.h.bf16 %v2532_v7  ;;  %v2537_v55 = vunpack.c.l.bf16 %v2532_v7 }
0x107d   :  { %v2481_v52 = vrot.slane %v2480_v51, 1  ;;  %v2455_v4 = vrot.slane %v2454_v61, 4  ;;  %v2448_v27 = vrot.slane %v2447_v12, 2 }
0x107e   :  { %2896 = vmatprep.subr.mxu1 %v2536_v45 }
0x107f   :  { %v2482_v5 = vmax.f32 %v2480_v51, %v2481_v52  ;;  %v2456_v3 = vmax.f32 %v2454_v61, %v2455_v4  ;;  %v2449_v58 = vmax.f32 %v2447_v12, %v2448_v27  ;;  %2897 = vmatpush1.xpose.msra.mxu1 %v2535_v11  ;;  %v2533_v51 = vld [vmem:[#allocation5 + $0x90] sm:$0xff] }
0x1080   :  { %v2539_v61 = vunpack.c.l.bf16 %v2533_v51  ;;  %v2540_v52 = vunpack.c.h.bf16 %v2533_v51 }
0x1081   :  { %v2546_v13 = vsel %vm2545_vm15, %v2482_v5, %v2471_v63  ;;  %v2457_v20 = vrot.slane %v2456_v3, 2  ;;  %v2450_v33 = vrot.slane %v2449_v58, 1 }
0x1082   :  { %3133 = vmatmul.mubr.msk.f32.vlgmr.msra.gmra.mxu0 %vm322_vm6, %v2546_v13  ;;  %v2845_v5 = vrot.slane %v2540_v52, %v3986_v39 }
0x1083   :  { %2645 = vmatpush1.msra.mxu0 %v2529_v57  ;;  %2684 = vmatprep.mubr.f32.mxu0 %v3891_v1  ;;  %v2458_v29 = vmax.f32 %v2456_v3, %v2457_v20  ;;  %v2451_v34 = vmax.f32 %v2449_v58, %v2450_v33  ;;  %v2841_v57 = vrot.slane %v2539_v61, %v3986_v39  ;;  %v3894_v58 = vmov 1966171168  }
0x1084   :  { %2646 = vmatprep.subr.mxu0 %v2526_v9 }
0x1085   :  { %2647 = vmatpush1.msra.mxu0 %v2525_v15  ;;  %v2459_v42 = vrot.slane %v2458_v29, 1 }
0x1086   :  { %2648 = vmatprep.subr.mxu0 %v2522_v26 }
0x1087   :  { %2649 = vmatpush1.msra.mxu0 %v2521_v25  ;;  %v2460_v60 = vmax.f32 %v2458_v29, %v2459_v42  ;;  %v2865_v42 = vrot.slane %v2539_v61, %v4095_v23 }
0x1088   :  { %2650 = vmatprep.subr.mxu0 %v2518_v22  ;;  %v2853_v22 = vrot.slane %v2542_v18, %v3986_v39 }
0x1089   :  { %2651 = vmatpush1.msra.mxu0 %v2517_v28  ;;  %v2693_v44 = vsel %vm2545_vm15, %v2460_v60, %v2451_v34 }
0x108a   :  { %3134 = vmatmul.mubr.msk.f32.vlgmr.msra.gmra.mxu0 %vm322_vm6, %v2546_v13  ;;  %2720 = vmatprep.subr.mxu0 %v2504_v35  ;;  %v2541_v13 = vunpack.c.l.bf16 %v2534_v6 }
0x108b   :  { %2721 = vmatpush1.msra.mxu0 %v2503_v37  ;;  %2760 = vmatprep.mubr.f32.mxu0 %v3891_v1 }
0x108c   :  { %2722 = vmatprep.subr.mxu0 %v2500_v40  ;;  %v2849_v59 = vrot.slane %v2541_v13, %v3986_v39  ;;  %v3008_v40 = vunpack.c.l.s4 %v3894_v58 }
0x108d   :  { %2723 = vmatpush1.msra.mxu0 %v2499_v54 }
0x108e   :  { %2724 = vmatprep.subr.mxu0 %v2496_v10  ;;  %v3009_v10 = vunpack.c.0.s8 %v3008_v40 }
0x108f   :  { %2725 = vmatpush1.msra.mxu0 %v2495_v56 }
0x1090   :  { %2726 = vmatprep.subr.mxu0 %v2492_v16  ;;  %v3012_v33 = vsub.s32 %v3009_v10, %v3983_v38 }
0x1091   :  { %2727 = vmatpush1.msra.mxu0 %v2491_v47 }
0x1092   :  { %3135 = vmatmul.mubr.msk.f32.vlgmr.msra.gmra.mxu0 %vm322_vm6, %v2693_v44  ;;  %2791 = vmatprep.subr.mxu0 %v2506_v30 }
0x1093   :  { %2792 = vmatpush1.msra.mxu0 %v2505_v36  ;;  %2831 = vmatprep.mubr.f32.mxu0 %v3891_v1 }
0x1094   :  { %2793 = vmatprep.subr.mxu0 %v2502_v62 }
0x1095   :  { %2794 = vmatpush1.msra.mxu0 %v2501_v50 }
0x1096   :  { %2795 = vmatprep.subr.mxu0 %v2498_v19 }
0x1097   :  { %2796 = vmatpush1.msra.mxu0 %v2497_v46 }
0x1098   :  { %2797 = vmatprep.subr.mxu0 %v2494_v14 }
0x1099   :  { %2798 = vmatpush1.msra.mxu0 %v2493_v43 }
0x109a   :  { %3136 = vmatmul.mubr.msk.f32.vlgmr.msra.gmra.mxu0 %vm322_vm6, %v2693_v44  ;;  %2966 = vmatprep.subr.mxu0 %v2538_v21 }
0x109b   :  { %2967 = vmatpush1.xpose.msra.mxu0 %v2537_v55 }
0x1142   :  { %v2615_v1 = vpop.f32.mrf.mxu0 }
0x1144   :  { %v2617_v0 = vpop.f32.mrf.mxu0 }
0x114a   :  { %v2686_v17 = vpop.f32.mrf.mxu0 }
0x114c   :  { %v2688_v8 = vpop.f32.mrf.mxu0 }
0x1152   :  { %v2762_v4 = vpop.f32.mrf.mxu0 }
0x1153   :  { %v2763_v63 = vadd.f32 %v2762_v4, %v2615_v1 }
0x1154   :  { %v2764_v12 = vpop.f32.mrf.mxu0 }
0x1155   :  { %v2765_v3 = vadd.f32 %v2764_v12, %v2617_v0  ;;  %v2854_v9 = vadd.f32 %v2841_v57, %v2763_v63 }
0x1157   :  { %v2855_v15 = vadd.f32 %v2845_v5, %v2765_v3  ;;  %v2858_v26 = vmax.f32 %v2854_v9, 0.0 }
0x1159   :  { %v2859_v20 = vmax.f32 %v2855_v15, 0.0 }
0x115a   :  { %v2833_v25 = vpop.f32.mrf.mxu0 }
0x115b   :  { %v2834_v27 = vadd.f32 %v2833_v25, %v2686_v17  ;;  %2930 = vmatprep.mubr.f32.mxu1 %v2859_v20 }
0x115c   :  { %v2835_v28 = vpop.f32.mrf.mxu0  ;;  %2931 = vmatmul.mubr.f32.vlgmr.msra.gmra.mxu1 %v2858_v26 }
0x115d   :  { %v2836_v31 = vadd.f32 %v2835_v28, %v2688_v8  ;;  %v2856_v29 = vadd.f32 %v2849_v59, %v2834_v27 }
0x115f   :  { %v2857_v35 = vadd.f32 %v2853_v22, %v2836_v31  ;;  %v2860_v41 = vmax.f32 %v2856_v29, 0.0 }
0x1161   :  { %v2861_v37 = vmax.f32 %v2857_v35, 0.0 }
0x1163   :  { %3000 = vmatprep.mubr.f32.mxu0 %v2861_v37 }
0x1164   :  { %3001 = vmatmul.mubr.f32.vlgmr.msra.gmra.mxu0 %v2860_v41 }
0x121c   :  { %v2932_v54 = vpop.f32.mrf.mxu1 }
0x121d   :  { %v2933_v56 = vadd.f32 %v2932_v54, %v2865_v42 }
0x121e   :  { %v2934_v32 = vpop.f32.mrf.mxu1 }
0x1224   :  { %v3002_v39 = vpop.f32.mrf.mxu0 }
0x1225   :  { %v3003_v53 = vadd.f32 %v3002_v39, %v2933_v56 }
0x1226   :  { %v3004_v16 = vpop.f32.mrf.mxu0 }
0x1227   :  { %v3013_v47 = vrot.slane %v3003_v53, %v3012_v33 }
0x1229   :  { %v3014_v60 = vcombine.high %v3013_v47, %v3013_v47  ;;  %v3021_v48 = vrot.slane %v3013_v47, %v3012_v33 }
0x122b   :  { %v3028_v30 = vrot.slane %v3014_v60, %v3012_v33  ;;  %3032 = vst.msk [vmem:[#allocation7] sm:$0x1] %vm3031_vm0, %v3021_v48 }
0x122d   :  { %3033 = vst.msk [vmem:[#allocation7 + $0x1] sm:$0x1] %vm3031_vm0, %v3028_v30 }
0x122e   :  { %3869 = shalt.err (!%p3866_p0)
}
0x122f   :  { %s3896_s5 = smov 1  }
0x1230   :  { %3045 = dma.vmem_to_hbm [thread:$0]  %s3040_s29, 32, %s4529_s4, [#allocation4], %s3889_s26, %s3889_s26, %s3896_s5  }
0x1231   :  { %3882 = dma.done.wait [#allocation4], 32  }
0x1232   :  { %3883 = vsyncadd [#allocation4], 4294967264 }
0x1233   :  { %3049 = vsyncpa [#allocation3], 1 }
0x1234   :  { %3050 = vsyncpa [#allocation6], 1 }
0x1235   :  { %3051 = vsyncpa [#allocation4], 1 }

</bundles_post_ra>
